<compile_context>
chip_gen: v7x
topology: tpu7x:2x2x1
jax: 0.10.0
libtpu: 0.0.40
codegen_flags: <defaults>
</compile_context>

<pallas_src>
import functools

import jax
import jax.numpy as jnp
from jax.experimental import pallas as pl
from jax.experimental.pallas import tpu as pltpu


# --------------------------------------------------------------------------- #
# Small helpers
# --------------------------------------------------------------------------- #
def _round_up(x, m):
    return ((x + m - 1) // m) * m


def _cdiv(a, b):
    return (a + b - 1) // b


def _vmem_capacity_bytes():
    """Per-core VMEM capacity; conservative 64 MiB (v7x) fallback."""
    try:
        info = pltpu.get_tpu_info()
        for name in ("vmem_capacity_bytes", "vmem_size_bytes", "vmem_bytes"):
            v = getattr(info, name, None)
            if v:
                return int(v)
    except Exception:
        pass
    return 64 * 1024 * 1024


def _const_weight_spec(shape, index_map, single_buffer):
    """BlockSpec for a grid-constant weight block.

    Single-buffers it (the block is DMA'd once and never changes), reclaiming
    VMEM so block_b can grow; falls back to default double-buffering.
    """
    if single_buffer:
        buffered = getattr(pl, "Buffered", None)
        if buffered is not None:
            try:
                return pl.BlockSpec(shape, index_map, pipeline_mode=buffered(1))
            except TypeError:
                pass
    return pl.BlockSpec(shape, index_map)


# --------------------------------------------------------------------------- #
# Kernel 1: fused path — whole T in VMEM per batch block
# --------------------------------------------------------------------------- #
def _temporal_attn_fused_kernel(h_ref, w1_ref, w2a_ref, w2b_ref, av_ref, attn_ref):
    # h_ref:   (Bb, T, H) hidden-state block (input dtype; bf16 streams as bf16)
    # w1_ref:  (H, H)  fc1 weight, torch (out, in) layout
    # w2a_ref: (H, H)  fc2 weight, context half, pre-transposed to (in, out)
    # w2b_ref: (H, H)  fc2 weight, h_t half,     pre-transposed to (in, out)
    h32 = h_ref[...].astype(jnp.float32)              # up-cast ONCE, reuse below
    T = h32.shape[1]
    h_t = h32[:, T - 1, :]                             # (Bb, H)

    w1 = w1_ref[...].astype(jnp.float32)
    w2a = w2a_ref[...].astype(jnp.float32)
    w2b = w2b_ref[...].astype(jnp.float32)

    # score[b,t] = h[b,t,:] . (h_t @ W1)[b,:]
    q = jnp.dot(h_t, w1, preferred_element_type=jnp.float32)          # (Bb, H)
    score = jnp.sum(q[:, None, :] * h32, axis=-1)                     # (Bb, T)

    # softmax over time
    m = jnp.max(score, axis=-1, keepdims=True)
    e = jnp.exp(score - m)
    # exact reciprocal: keeps attention weights comparable to reference at 1e-5
    attn = e * pl.reciprocal(jnp.sum(e, axis=-1, keepdims=True), approx=False)

    # context_vector[b,h] = sum_t attn[b,t] * h[b,t,h]
    ctx = jnp.sum(attn[:, :, None] * h32, axis=1)                     # (Bb, H)

    av = jnp.tanh(
        jnp.dot(ctx, w2a, preferred_element_type=jnp.float32)
        + jnp.dot(h_t, w2b, preferred_element_type=jnp.float32)
    )
    av_ref[...] = av.astype(av_ref.dtype)

    # Lane-dense attention-weight store: pad last dim to the HBM output width.
    Tp = attn_ref.shape[-1]
    if Tp > T:
        attn = jnp.concatenate(
            [attn, jnp.zeros((attn.shape[0], Tp - T), attn.dtype)], axis=-1)
    attn_ref[...] = attn.astype(attn_ref.dtype)


def _call_fused(h_p, h_dtype, w1, w2a, w2b, block_b, Tp, single_buffer, vmem_limit):
    Bp, T, H = h_p.shape
    n_blocks = Bp // block_b
    in_b = jnp.dtype(h_dtype).itemsize
    w_b = jnp.dtype(w1.dtype).itemsize

    cost = pl.CostEstimate(
        flops=2 * Bp * (3 * H * H + 2 * T * H),
        transcendentals=Bp * (T + H),
        bytes_accessed=Bp * T * H * in_b + 3 * H * H * w_b
        + Bp * (H * in_b + Tp * 4),
    )

    return pl.pallas_call(
        _temporal_attn_fused_kernel,
        out_shape=(
            jax.ShapeDtypeStruct((Bp, H), h_dtype),     # attention_vector
            jax.ShapeDtypeStruct((Bp, Tp), jnp.float32),  # attention_weights (padded)
        ),
        grid_spec=pltpu.PrefetchScalarGridSpec(
            num_scalar_prefetch=0,
            grid=(n_blocks,),
            in_specs=[
                pl.BlockSpec((block_b, T, H), lambda b: (b, 0, 0)),
                _const_weight_spec((H, H), lambda b: (0, 0), single_buffer),
                _const_weight_spec((H, H), lambda b: (0, 0), single_buffer),
                _const_weight_spec((H, H), lambda b: (0, 0), single_buffer),
            ],
            out_specs=[
                pl.BlockSpec((block_b, H), lambda b: (b, 0)),
                pl.BlockSpec((block_b, Tp), lambda b: (b, 0)),
            ],
        ),
        compiler_params=pltpu.CompilerParams(
            dimension_semantics=("parallel",),
            vmem_limit_bytes=vmem_limit,
        ),
        cost_estimate=cost,
    )(h_p, w1, w2a, w2b)


# --------------------------------------------------------------------------- #
# Kernel 2: T-blocked online-softmax path (long sequences)
# --------------------------------------------------------------------------- #
def _temporal_attn_tblocked_kernel(h_ref, ht_ref, w1_ref, w2a_ref, w2b_ref,
                                   av_ref, attn_ref,
                                   q_sc, m_sc, l_sc, acc_sc, score_sc,
                                   *, t_actual, block_t):
    t = pl.program_id(1)
    nt = pl.num_programs(1)

    h32 = h_ref[...].astype(jnp.float32)               # (Bb, tT, H)

    @pl.when(t == 0)
    def _init():
        h_t0 = ht_ref[...].astype(jnp.float32)         # (Bb, H)
        q_sc[...] = jnp.dot(h_t0, w1_ref[...].astype(jnp.float32),
                            preferred_element_type=jnp.float32)
        m_sc[...] = jnp.full_like(m_sc, -jnp.inf)
        l_sc[...] = jnp.zeros_like(l_sc)
        acc_sc[...] = jnp.zeros_like(acc_sc)

    q = q_sc[...]                                       # (Bb, H)
    s = jnp.sum(q[:, None, :] * h32, axis=-1)           # (Bb, tT)

    # Mask padded timesteps of the last (partial) T block.
    if t_actual % block_t != 0:
        t_idx = t * block_t + jax.lax.broadcasted_iota(jnp.int32, s.shape, 1)
        s = jnp.where(t_idx < t_actual, s, -jnp.inf)

    # Stash raw scores for the final attention-weight write-out.
    off = pl.multiple_of(t * block_t, block_t)
    score_sc[:, pl.ds(off, block_t)] = s

    # Online softmax accumulation (flash-attention style).
    m_old = m_sc[...]
    m_new = jnp.maximum(m_old, jnp.max(s, axis=-1, keepdims=True))
    alpha = jnp.exp(m_old - m_new)
    p = jnp.exp(s - m_new)                               # (Bb, tT)
    l_sc[...] = alpha * l_sc[...] + jnp.sum(p, axis=-1, keepdims=True)
    acc_sc[...] = alpha * acc_sc[...] + jnp.sum(p[:, :, None] * h32, axis=1)
    m_sc[...] = m_new

    @pl.when(t == nt - 1)
    def _finalize():
        h_t = ht_ref[...].astype(jnp.float32)            # (Bb, H)
        inv_l = pl.reciprocal(l_sc[...], approx=False)
        ctx = acc_sc[...] * inv_l                        # (Bb, H)
        av = jnp.tanh(
            jnp.dot(ctx, w2a_ref[...].astype(jnp.float32),
                    preferred_element_type=jnp.float32)
            + jnp.dot(h_t, w2b_ref[...].astype(jnp.float32),
                      preferred_element_type=jnp.float32))
        av_ref[...] = av.astype(av_ref.dtype)
        attn = jnp.exp(score_sc[...] - m_sc[...]) * inv_l  # (Bb, T_grid)
        attn_ref[...] = attn.astype(attn_ref.dtype)


def _call_t_blocked(h_p, ht_arr, h_dtype, w1, w2a, w2b, block_b, block_t,
                    t_actual, single_buffer, vmem_limit):
    Bp, T_grid, H = h_p.shape
    n_b = Bp // block_b
    n_t = T_grid // block_t
    in_b = jnp.dtype(h_dtype).itemsize
    w_b = jnp.dtype(w1.dtype).itemsize

    cost = pl.CostEstimate(
        flops=2 * Bp * (3 * H * H + 2 * T_grid * H),
        transcendentals=Bp * (2 * T_grid + H),
        bytes_accessed=Bp * T_grid * H * in_b + Bp * H * in_b
        + 3 * H * H * w_b + Bp * (H * in_b + T_grid * 4),
    )

    kernel = functools.partial(_temporal_attn_tblocked_kernel,
                               t_actual=t_actual, block_t=block_t)

    return pl.pallas_call(
        kernel,
        out_shape=(
            jax.ShapeDtypeStruct((Bp, H), h_dtype),        # attention_vector
            jax.ShapeDtypeStruct((Bp, T_grid), jnp.float32),  # attention_weights
        ),
        grid_spec=pltpu.PrefetchScalarGridSpec(
            num_scalar_prefetch=0,
            grid=(n_b, n_t),
            in_specs=[
                pl.BlockSpec((block_b, block_t, H), lambda b, t: (b, t, 0)),
                pl.BlockSpec((block_b, H), lambda b, t: (b, 0)),  # h_t (last step)
                _const_weight_spec((H, H), lambda b, t: (0, 0), single_buffer),
                _const_weight_spec((H, H), lambda b, t: (0, 0), single_buffer),
                _const_weight_spec((H, H), lambda b, t: (0, 0), single_buffer),
            ],
            out_specs=[
                pl.BlockSpec((block_b, H), lambda b, t: (b, 0)),
                pl.BlockSpec((block_b, T_grid), lambda b, t: (b, 0)),
            ],
            scratch_shapes=[
                pltpu.VMEM((block_b, H), jnp.float32),        # q = h_t @ W1
                pltpu.VMEM((block_b, 1), jnp.float32),        # running max
                pltpu.VMEM((block_b, 1), jnp.float32),        # running sum
                pltpu.VMEM((block_b, H), jnp.float32),        # running context
                pltpu.VMEM((block_b, T_grid), jnp.float32),   # raw scores
            ],
        ),
        compiler_params=pltpu.CompilerParams(
            dimension_semantics=("parallel", "arbitrary"),
            vmem_limit_bytes=vmem_limit,
        ),
        cost_estimate=cost,
    )(h_p, ht_arr, w1, w2a, w2b)


# --------------------------------------------------------------------------- #
# Public wrapper
# --------------------------------------------------------------------------- #
def temporal_attn(hidden_states, w1, w2, *, block_b=None, block_t=None,
                  t_blocked=None, single_buffer_weights=True):
    """hidden_states: (B, T, H); w1: (H, H) (out, in); w2: (H, 2H) (out, in).

    Returns (attention_vector (B, H), attention_weights (B, T) float32).
    """
    B, T, H = hidden_states.shape
    assert w1.shape == (H, H)
    assert w2.shape == (H, 2 * H)

    # Split + pre-transpose fc2 once (outside the kernel, by XLA).
    w2a = jnp.transpose(w2[:, :H])        # acts on the context vector
    w2b = jnp.transpose(w2[:, H:])        # acts on h_t

    in_b = jnp.dtype(hidden_states.dtype).itemsize
    w_b = jnp.dtype(w1.dtype).itemsize
    capacity = _vmem_capacity_bytes()
    budget = int(capacity * 0.7)          # headroom for spills / compiler scratch
    vmem_limit = int(capacity * 0.9)      # explicit scoped-VMEM limit

    Tp = _round_up(T, 128)                # lane-dense attention-weight output
    cap_b = min(512, _round_up(B, 8))
    weight_bufs = 1 if single_buffer_weights else 2
    fixed = weight_bufs * 3 * H * H * w_b + (1 << 20)

    # Largest batch tile for which the whole (block_b, T, H) slab fits VMEM.
    f32_copy = 0 if in_b >= 4 else T * H * 4
    per_row_fused = (2 * T * H * in_b                    # double-buffered input
                     + T * H * 4 + f32_copy              # live f32 intermediates
                     + 2 * (H * in_b + Tp * 4))          # double-buffered outputs
    bb_fused = (budget - fixed) // max(per_row_fused, 1)
    bb_fused = min(cap_b, (bb_fused // 8) * 8)

    use_t_blocked = t_blocked
    if use_t_blocked is None:
        # Fused path only if we can keep a reasonably large batch tile.
        use_t_blocked = bb_fused < min(64, cap_b)

    def _finalize_block_b(bb):
        bb = max(8, min(cap_b, _round_up(bb, 8)))
        # Feed both TensorCores on v7x: make sure there are >= 2 batch blocks.
        if B >= 16 and _cdiv(B, bb) == 1:
            bb = max(8, _round_up(_cdiv(B, 2), 8))
        return bb

    if not use_t_blocked:
        bb = _finalize_block_b(block_b if block_b is not None else max(8, bb_fused))
        Bp = _round_up(B, bb)
        h_p = hidden_states
        if Bp != B:
            h_p = jnp.pad(hidden_states, ((0, Bp - B), (0, 0), (0, 0)))

        def run(sb):
            return _call_fused(h_p, hidden_states.dtype, w1, w2a, w2b,
                               bb, Tp, sb, vmem_limit)
    else:
        bt = block_t if block_t is not None else 128
        bt = max(128, _round_up(bt, 128))               # lane-aligned score stores
        bt = min(bt, _round_up(T, 128))
        T_grid = _round_up(T, bt)

        per_row_tb = (2 * bt * H * in_b + bt * H * 4
                      + 2 * (H * in_b + T_grid * 4)
                      + (2 * H + 2 + T_grid) * 4)       # scratch accumulators
        bb_tb = (budget - fixed) // max(per_row_tb, 1)
        bb = _finalize_block_b(block_b if block_b is not None else bb_tb)

        Bp = _round_up(B, bb)
        h_p = jnp.pad(hidden_states,
                      ((0, Bp - B), (0, T_grid - T), (0, 0)))
        ht_arr = jnp.pad(hidden_states[:, T - 1, :], ((0, Bp - B), (0, 0)))

        def run(sb):
            return _call_t_blocked(h_p, ht_arr, hidden_states.dtype, w1, w2a, w2b,
                                   bb, bt, T, sb, vmem_limit)

    try:
        av, attn = run(single_buffer_weights)
    except Exception:
        if not single_buffer_weights:
            raise
        # Retry with default double-buffered weight blocks.
        av, attn = run(False)

    return av[:B], attn[:B, :T]


def temporal_attn_reference(hidden_states, w1, w2):
    """Pure-JAX reference matching the PyTorch forward exactly."""
    sfp = jnp.einsum("bth,oh->bto", hidden_states, w1)              # fc1
    h_t = hidden_states[:, -1, :]                                   # (B, H)
    score = jnp.einsum("bto,bo->bt", sfp, h_t)                      # (B, T)
    attn = jax.nn.softmax(score, axis=1)                            # (B, T)
    ctx = jnp.einsum("bth,bt->bh", hidden_states, attn)             # (B, H)
    pre = jnp.concatenate([ctx, h_t], axis=1)                       # (B, 2H)
    av = jnp.tanh(jnp.einsum("bi,oi->bo", pre, w2))                 # fc2 + tanh
    return av, attn


if __name__ == "__main__":
    key = jax.random.PRNGKey(0)
    k_x, k_w1, k_w2 = jax.random.split(key, 3)

    # --- small config implied by the module (B=2, T=8, H=32): fused path ----
    B, T, H = 2, 8, 32
    x = jax.random.normal(k_x, (B, T, H), dtype=jnp.float32)
    w1 = jax.random.normal(k_w1, (H, H), dtype=jnp.float32) * (1.0 / jnp.sqrt(H))
    w2 = jax.random.normal(k_w2, (H, 2 * H), dtype=jnp.float32) * (1.0 / jnp.sqrt(2.0 * H))

    av, attn = temporal_attn(x, w1, w2)
    jax.block_until_ready((av, attn))
    av_ref, attn_ref = temporal_attn_reference(x, w1, w2)
    assert av.shape == (B, H) and attn.shape == (B, T)
    assert jnp.allclose(av, av_ref, atol=1e-5, rtol=1e-5), "attention_vector mismatch"
    assert jnp.allclose(attn, attn_ref, atol=1e-5, rtol=1e-5), "attention_weights mismatch"

    # --- bf16 streaming path (HBM traffic halved, f32 accumulation) ---------
    x16 = x.astype(jnp.bfloat16)
    av16, attn16 = temporal_attn(x16, w1, w2)
    jax.block_until_ready((av16, attn16))
    av_ref16, attn_ref16 = temporal_attn_reference(x16.astype(jnp.float32), w1, w2)
    assert av16.dtype == jnp.bfloat16
    assert jnp.allclose(av16.astype(jnp.float32), av_ref16, atol=2e-2, rtol=2e-2), \
        "bf16 attention_vector mismatch"
    assert jnp.allclose(attn16, attn_ref16, atol=2e-2, rtol=2e-2), \
        "bf16 attention_weights mismatch"

    # --- T-blocked online-softmax path (long sequences), forced small config -
    B2, T2, H2 = 4, 200, 128
    k2x, k2w1, k2w2 = jax.random.split(jax.random.PRNGKey(0), 3)
    x2 = jax.random.normal(k2x, (B2, T2, H2), dtype=jnp.float32)
    w1_2 = jax.random.normal(k2w1, (H2, H2), dtype=jnp.float32) * (1.0 / jnp.sqrt(H2))
    w2_2 = jax.random.normal(k2w2, (H2, 2 * H2), dtype=jnp.float32) * (1.0 / jnp.sqrt(2.0 * H2))

    av2, attn2 = temporal_attn(x2, w1_2, w2_2, t_blocked=True, block_t=128, block_b=8)
    jax.block_until_ready((av2, attn2))
    av2_ref, attn2_ref = temporal_attn_reference(x2, w1_2, w2_2)
    assert av2.shape == (B2, H2) and attn2.shape == (B2, T2)
    assert jnp.allclose(av2, av2_ref, atol=1e-4, rtol=1e-4), \
        "T-blocked attention_vector mismatch"
    assert jnp.allclose(attn2, attn2_ref, atol=1e-4, rtol=1e-4), \
        "T-blocked attention_weights mismatch"

    print("KERNEL_OK")
</pallas_src>

<mosaic_0001>
module attributes {stable_mosaic.version = 11 : i64} {
  func.func @_temporal_attn_fused_kernel(%arg0: i32, %arg1: memref<8x8x32xf32, #tpu.memory_space<vmem>>, %arg2: memref<32x32xf32, #tpu.memory_space<vmem>>, %arg3: memref<32x32xf32, #tpu.memory_space<vmem>>, %arg4: memref<32x32xf32, #tpu.memory_space<vmem>>, %arg5: memref<8x32xf32, #tpu.memory_space<vmem>>, %arg6: memref<8x128xf32, #tpu.memory_space<vmem>>) attributes {dimension_semantics = [#tpu.dimension_semantics<parallel>], iteration_bounds = array<i64: 1>, scalar_prefetch = 0 : i64, scratch_operands = 0 : i64, tpu.core_type = #tpu.core_type<tc>, window_params = [{transform_indices = @transform_0, window_bounds = array<i64: 8, 8, 32>}, {pipeline_mode = #tpu.pipeline_mode<synchronous>, transform_indices = @transform_1, window_bounds = array<i64: 32, 32>}, {pipeline_mode = #tpu.pipeline_mode<synchronous>, transform_indices = @transform_2, window_bounds = array<i64: 32, 32>}, {pipeline_mode = #tpu.pipeline_mode<synchronous>, transform_indices = @transform_3, window_bounds = array<i64: 32, 32>}, {transform_indices = @transform_4, window_bounds = array<i64: 8, 32>}, {transform_indices = @transform_5, window_bounds = array<i64: 8, 128>}]} {
    %c0 = arith.constant 0 : index
    %c0_0 = arith.constant 0 : index
    %c0_1 = arith.constant 0 : index
    %0 = vector.load %arg1[%c0, %c0_0, %c0_1] : memref<8x8x32xf32, #tpu.memory_space<vmem>>, vector<8x8x32xf32>
    %1 = vector.extract_strided_slice %0 {offsets = [0, 7, 0], sizes = [8, 1, 32], strides = [1, 1, 1]} : vector<8x8x32xf32> to vector<8x1x32xf32>
    %2 = vector.shape_cast %1 : vector<8x1x32xf32> to vector<8x32xf32>
    %c0_2 = arith.constant 0 : index
    %c0_3 = arith.constant 0 : index
    %3 = vector.load %arg2[%c0_2, %c0_3] : memref<32x32xf32, #tpu.memory_space<vmem>>, vector<32x32xf32>
    %c0_4 = arith.constant 0 : index
    %c0_5 = arith.constant 0 : index
    %4 = vector.load %arg3[%c0_4, %c0_5] : memref<32x32xf32, #tpu.memory_space<vmem>>, vector<32x32xf32>
    %c0_6 = arith.constant 0 : index
    %c0_7 = arith.constant 0 : index
    %5 = vector.load %arg4[%c0_6, %c0_7] : memref<32x32xf32, #tpu.memory_space<vmem>>, vector<32x32xf32>
    %cst = arith.constant dense<0.000000e+00> : vector<8x32xf32>
    %6 = tpu.matmul %2, %3, %cst {dimension_numbers = #tpu.dot_dimension_numbers<[1], [0], [0], [1], [0, 0, 1, 1], [], []>} : vector<8x32xf32>, vector<32x32xf32>, vector<8x32xf32> -> vector<8x32xf32>
    %7 = vector.shape_cast %6 : vector<8x32xf32> to vector<8x1x32xf32>
    %8 = vector.broadcast %7 : vector<8x1x32xf32> to vector<8x8x32xf32>
    %9 = arith.mulf %8, %0 : vector<8x8x32xf32>
    %cst_8 = arith.constant dense<0.000000e+00> : vector<8x8xf32>
    %10 = vector.multi_reduction <add>, %9, %cst_8 [2] : vector<8x8x32xf32> to vector<8x8xf32>
    %cst_9 = arith.constant dense<0xFF800000> : vector<8xf32>
    %11 = vector.multi_reduction <maximumf>, %10, %cst_9 [1] : vector<8x8xf32> to vector<8xf32>
    %12 = vector.shape_cast %11 : vector<8xf32> to vector<8x1xf32>
    %13 = vector.broadcast %12 : vector<8x1xf32> to vector<8x8xf32>
    %14 = arith.subf %10, %13 : vector<8x8xf32>
    %15 = math.exp %14 : vector<8x8xf32>
    %cst_10 = arith.constant dense<0.000000e+00> : vector<8xf32>
    %16 = vector.multi_reduction <add>, %15, %cst_10 [1] : vector<8x8xf32> to vector<8xf32>
    %17 = vector.shape_cast %16 : vector<8xf32> to vector<8x1xf32>
    %18 = tpu.reciprocal %17 : vector<8x1xf32> -> vector<8x1xf32>
    %19 = vector.broadcast %18 : vector<8x1xf32> to vector<8x8xf32>
    %20 = arith.mulf %15, %19 : vector<8x8xf32>
    %21 = vector.shape_cast %20 : vector<8x8xf32> to vector<8x8x1xf32>
    %22 = vector.broadcast %21 : vector<8x8x1xf32> to vector<8x8x32xf32>
    %23 = arith.mulf %22, %0 : vector<8x8x32xf32>
    %cst_11 = arith.constant dense<0.000000e+00> : vector<8x32xf32>
    %24 = vector.multi_reduction <add>, %23, %cst_11 [1] : vector<8x8x32xf32> to vector<8x32xf32>
    %cst_12 = arith.constant dense<0.000000e+00> : vector<8x32xf32>
    %25 = tpu.matmul %24, %4, %cst_12 {dimension_numbers = #tpu.dot_dimension_numbers<[1], [0], [0], [1], [0, 0, 1, 1], [], []>} : vector<8x32xf32>, vector<32x32xf32>, vector<8x32xf32> -> vector<8x32xf32>
    %cst_13 = arith.constant dense<0.000000e+00> : vector<8x32xf32>
    %26 = tpu.matmul %2, %5, %cst_13 {dimension_numbers = #tpu.dot_dimension_numbers<[1], [0], [0], [1], [0, 0, 1, 1], [], []>} : vector<8x32xf32>, vector<32x32xf32>, vector<8x32xf32> -> vector<8x32xf32>
    %27 = arith.addf %25, %26 : vector<8x32xf32>
    %28 = math.tanh %27 : vector<8x32xf32>
    %c0_14 = arith.constant 0 : index
    %c0_15 = arith.constant 0 : index
    %29 = vector.load %arg5[%c0_14, %c0_15] : memref<8x32xf32, #tpu.memory_space<vmem>>, vector<8x32xf32>
    tpu.vector_store %arg5[%c0_14, %c0_15], %28 {strides = array<i32>} : memref<8x32xf32, #tpu.memory_space<vmem>>, vector<8x32xf32>,
    %cst_16 = arith.constant 0.000000e+00 : f32
    %30 = vector.broadcast %cst_16 : f32 to vector<8x120xf32>
    %31 = tpu.concatenate %20, %30 in 1 : vector<8x8xf32>, vector<8x120xf32> -> vector<8x128xf32>
    %c0_17 = arith.constant 0 : index
    %c0_18 = arith.constant 0 : index
    %32 = vector.load %arg6[%c0_17, %c0_18] : memref<8x128xf32, #tpu.memory_space<vmem>>, vector<8x128xf32>
    tpu.vector_store %arg6[%c0_17, %c0_18], %31 {strides = array<i32>} : memref<8x128xf32, #tpu.memory_space<vmem>>, vector<8x128xf32>,
    return
  }
  func.func @transform_0(%arg0: i32) -> (i32, i32, i32) {
    %c0_i32 = arith.constant 0 : i32
    %c0_i32_0 = arith.constant 0 : i32
    %c0_i32_1 = arith.constant 0 : i32
    return %arg0, %c0_i32, %c0_i32_0 : i32, i32, i32
  }
  func.func @transform_1(%arg0: i32) -> (i32, i32) {
    %c0_i32 = arith.constant 0 : i32
    %c0_i32_0 = arith.constant 0 : i32
    %c0_i32_1 = arith.constant 0 : i32
    return %c0_i32, %c0_i32_0 : i32, i32
  }
  func.func @transform_2(%arg0: i32) -> (i32, i32) {
    %c0_i32 = arith.constant 0 : i32
    %c0_i32_0 = arith.constant 0 : i32
    %c0_i32_1 = arith.constant 0 : i32
    return %c0_i32, %c0_i32_0 : i32, i32
  }
  func.func @transform_3(%arg0: i32) -> (i32, i32) {
    %c0_i32 = arith.constant 0 : i32
    %c0_i32_0 = arith.constant 0 : i32
    %c0_i32_1 = arith.constant 0 : i32
    return %c0_i32, %c0_i32_0 : i32, i32
  }
  func.func @transform_4(%arg0: i32) -> (i32, i32) {
    %c0_i32 = arith.constant 0 : i32
    %c0_i32_0 = arith.constant 0 : i32
    return %arg0, %c0_i32 : i32, i32
  }
  func.func @transform_5(%arg0: i32) -> (i32, i32) {
    %c0_i32 = arith.constant 0 : i32
    %c0_i32_0 = arith.constant 0 : i32
    return %arg0, %c0_i32 : i32, i32
  }
}

module attributes {stable_mosaic.version = 11 : i64} {
  func.func @_temporal_attn_fused_kernel(%arg0: i32, %arg1: memref<8x8x32xf32, #tpu.memory_space<vmem>>, %arg2: memref<32x32xf32, #tpu.memory_space<vmem>>, %arg3: memref<32x32xf32, #tpu.memory_space<vmem>>, %arg4: memref<32x32xf32, #tpu.memory_space<vmem>>, %arg5: memref<8x32xf32, #tpu.memory_space<vmem>>, %arg6: memref<8x128xf32, #tpu.memory_space<vmem>>) attributes {dimension_semantics = [#tpu.dimension_semantics<parallel>], iteration_bounds = array<i64: 1>, scalar_prefetch = 0 : i64, scratch_operands = 0 : i64, tpu.core_type = #tpu.core_type<tc>, window_params = [{transform_indices = @transform_0, window_bounds = array<i64: 8, 8, 32>}, {pipeline_mode = #tpu.pipeline_mode<synchronous>, transform_indices = @transform_1, window_bounds = array<i64: 32, 32>}, {pipeline_mode = #tpu.pipeline_mode<synchronous>, transform_indices = @transform_2, window_bounds = array<i64: 32, 32>}, {pipeline_mode = #tpu.pipeline_mode<synchronous>, transform_indices = @transform_3, window_bounds = array<i64: 32, 32>}, {transform_indices = @transform_4, window_bounds = array<i64: 8, 32>}, {transform_indices = @transform_5, window_bounds = array<i64: 8, 128>}]} {
    %c0 = arith.constant 0 : index
    %c0_0 = arith.constant 0 : index
    %c0_1 = arith.constant 0 : index
    %0 = vector.load %arg1[%c0, %c0_0, %c0_1] : memref<8x8x32xf32, #tpu.memory_space<vmem>>, vector<8x8x32xf32>
    %1 = vector.extract_strided_slice %0 {offsets = [0, 7, 0], sizes = [8, 1, 32], strides = [1, 1, 1]} : vector<8x8x32xf32> to vector<8x1x32xf32>
    %2 = vector.shape_cast %1 : vector<8x1x32xf32> to vector<8x32xf32>
    %c0_2 = arith.constant 0 : index
    %c0_3 = arith.constant 0 : index
    %3 = vector.load %arg2[%c0_2, %c0_3] : memref<32x32xf32, #tpu.memory_space<vmem>>, vector<32x32xf32>
    %c0_4 = arith.constant 0 : index
    %c0_5 = arith.constant 0 : index
    %4 = vector.load %arg3[%c0_4, %c0_5] : memref<32x32xf32, #tpu.memory_space<vmem>>, vector<32x32xf32>
    %c0_6 = arith.constant 0 : index
    %c0_7 = arith.constant 0 : index
    %5 = vector.load %arg4[%c0_6, %c0_7] : memref<32x32xf32, #tpu.memory_space<vmem>>, vector<32x32xf32>
    %cst = arith.constant dense<0.000000e+00> : vector<8x32xf32>
    %6 = tpu.matmul %2, %3, %cst {dimension_numbers = #tpu.dot_dimension_numbers<[1], [0], [0], [1], [0, 0, 1, 1], [], []>} : vector<8x32xf32>, vector<32x32xf32>, vector<8x32xf32> -> vector<8x32xf32>
    %7 = vector.shape_cast %6 : vector<8x32xf32> to vector<8x1x32xf32>
    %8 = vector.broadcast %7 : vector<8x1x32xf32> to vector<8x8x32xf32>
    %9 = arith.mulf %8, %0 : vector<8x8x32xf32>
    %cst_8 = arith.constant dense<0.000000e+00> : vector<8x8xf32>
    %10 = vector.multi_reduction <add>, %9, %cst_8 [2] : vector<8x8x32xf32> to vector<8x8xf32>
    %cst_9 = arith.constant dense<0xFF800000> : vector<8xf32>
    %11 = vector.multi_reduction <maximumf>, %10, %cst_9 [1] : vector<8x8xf32> to vector<8xf32>
    %12 = vector.shape_cast %11 : vector<8xf32> to vector<8x1xf32>
    %13 = vector.broadcast %12 : vector<8x1xf32> to vector<8x8xf32>
    %14 = arith.subf %10, %13 : vector<8x8xf32>
    %15 = math.exp %14 : vector<8x8xf32>
    %cst_10 = arith.constant dense<0.000000e+00> : vector<8xf32>
    %16 = vector.multi_reduction <add>, %15, %cst_10 [1] : vector<8x8xf32> to vector<8xf32>
    %17 = vector.shape_cast %16 : vector<8xf32> to vector<8x1xf32>
    %18 = tpu.reciprocal %17 : vector<8x1xf32> -> vector<8x1xf32>
    %19 = vector.broadcast %18 : vector<8x1xf32> to vector<8x8xf32>
    %20 = arith.mulf %15, %19 : vector<8x8xf32>
    %21 = vector.shape_cast %20 : vector<8x8xf32> to vector<8x8x1xf32>
    %22 = vector.broadcast %21 : vector<8x8x1xf32> to vector<8x8x32xf32>
    %23 = arith.mulf %22, %0 : vector<8x8x32xf32>
    %cst_11 = arith.constant dense<0.000000e+00> : vector<8x32xf32>
    %24 = vector.multi_reduction <add>, %23, %cst_11 [1] : vector<8x8x32xf32> to vector<8x32xf32>
    %cst_12 = arith.constant dense<0.000000e+00> : vector<8x32xf32>
    %25 = tpu.matmul %24, %4, %cst_12 {dimension_numbers = #tpu.dot_dimension_numbers<[1], [0], [0], [1], [0, 0, 1, 1], [], []>} : vector<8x32xf32>, vector<32x32xf32>, vector<8x32xf32> -> vector<8x32xf32>
    %cst_13 = arith.constant dense<0.000000e+00> : vector<8x32xf32>
    %26 = tpu.matmul %2, %5, %cst_13 {dimension_numbers = #tpu.dot_dimension_numbers<[1], [0], [0], [1], [0, 0, 1, 1], [], []>} : vector<8x32xf32>, vector<32x32xf32>, vector<8x32xf32> -> vector<8x32xf32>
    %27 = arith.addf %25, %26 : vector<8x32xf32>
    %28 = math.tanh %27 : vector<8x32xf32>
    %c0_14 = arith.constant 0 : index
    %c0_15 = arith.constant 0 : index
    %29 = vector.load %arg5[%c0_14, %c0_15] : memref<8x32xf32, #tpu.memory_space<vmem>>, vector<8x32xf32>
    tpu.vector_store %arg5[%c0_14, %c0_15], %28 {strides = array<i32>} : memref<8x32xf32, #tpu.memory_space<vmem>>, vector<8x32xf32>,
    %cst_16 = arith.constant 0.000000e+00 : f32
    %30 = vector.broadcast %cst_16 : f32 to vector<8x120xf32>
    %31 = tpu.concatenate %20, %30 in 1 : vector<8x8xf32>, vector<8x120xf32> -> vector<8x128xf32>
    %c0_17 = arith.constant 0 : index
    %c0_18 = arith.constant 0 : index
    %32 = vector.load %arg6[%c0_17, %c0_18] : memref<8x128xf32, #tpu.memory_space<vmem>>, vector<8x128xf32>
    tpu.vector_store %arg6[%c0_17, %c0_18], %31 {strides = array<i32>} : memref<8x128xf32, #tpu.memory_space<vmem>>, vector<8x128xf32>,
    return
  }
  func.func @transform_0(%arg0: i32) -> (i32, i32, i32) {
    %c0_i32 = arith.constant 0 : i32
    %c0_i32_0 = arith.constant 0 : i32
    %c0_i32_1 = arith.constant 0 : i32
    return %arg0, %c0_i32, %c0_i32_0 : i32, i32, i32
  }
  func.func @transform_1(%arg0: i32) -> (i32, i32) {
    %c0_i32 = arith.constant 0 : i32
    %c0_i32_0 = arith.constant 0 : i32
    %c0_i32_1 = arith.constant 0 : i32
    return %c0_i32, %c0_i32_0 : i32, i32
  }
  func.func @transform_2(%arg0: i32) -> (i32, i32) {
    %c0_i32 = arith.constant 0 : i32
    %c0_i32_0 = arith.constant 0 : i32
    %c0_i32_1 = arith.constant 0 : i32
    return %c0_i32, %c0_i32_0 : i32, i32
  }
  func.func @transform_3(%arg0: i32) -> (i32, i32) {
    %c0_i32 = arith.constant 0 : i32
    %c0_i32_0 = arith.constant 0 : i32
    %c0_i32_1 = arith.constant 0 : i32
    return %c0_i32, %c0_i32_0 : i32, i32
  }
  func.func @transform_4(%arg0: i32) -> (i32, i32) {
    %c0_i32 = arith.constant 0 : i32
    %c0_i32_0 = arith.constant 0 : i32
    return %arg0, %c0_i32 : i32, i32
  }
  func.func @transform_5(%arg0: i32) -> (i32, i32) {
    %c0_i32 = arith.constant 0 : i32
    %c0_i32_0 = arith.constant 0 : i32
    return %arg0, %c0_i32 : i32, i32
  }
}

</mosaic_0001>

<bundles_post_ra>
// kernel: tpu_custom_call.1
= control target key start
LH: loop header
LB: loop body
LE: loop exit
PB: predicated region body
PF: predicated region fallthrough
CT: control target
= control target key end

     0   :  { %11 = vsyncpa [#allocation3], 0  ;;  %s1481_s0 = inlined_call_operand.hbm [shape: f32[8,8,32], index: 0, kind: input, shape index: {}]   ;;  %s1482_s1 = inlined_call_operand.hbm [shape: f32[32,32], index: 1, kind: input, shape index: {}]   ;;  %s1483_s2 = inlined_call_operand.hbm [shape: f32[32,32], index: 2, kind: input, shape index: {}]   ;;  %s1484_s3 = inlined_call_operand.hbm [shape: f32[32,32], index: 3, kind: input, shape index: {}]   ;;  %s1485_s4 = inlined_call_operand.hbm [shape: f32[8,32], index: 4, kind: output, shape index: {0}]   ;;  %s1486_s5 = inlined_call_operand.hbm [shape: f32[8,128], index: 5, kind: output, shape index: {1}]  }
   0x1   :  { %12 = vsyncpa [#allocation6], 0 }
   0x2   :  { %13 = vsyncpa [#allocation9], 0 }
   0x3   :  { %14 = vsyncpa [#allocation4], 0 }
   0x4   :  { %15 = vsyncpa [#allocation12], 0  ;;  %s1148_s18 = smov [#allocation5]   ;;  %s1149_s20 = smov [#allocation2]  }
   0x5   :  { %s33_s19 = sshll.u32 %s1148_s18, 4  ;;  %s21_s21 = sshll.u32 %s1149_s20, 4  ;;  %s34_s19 = int_to_ptr.vmem [resolvable:$true] %s33_s19  ;;  %s1191_s21 = int_to_ptr.vmem [resolvable:$true] %s21_s21 }
   0x6   :  { %s1006_s24 = scalar_lea.hbm %s1482_s1, 512 }
   0x7   :  { %p1007_p0 = scmp.ne.s32.totalorder %s1482_s1, %s1006_s24  ;;  %p1010_p1 = scmp.lt.u32.totalorder %s1006_s24, %s1482_s1 }
   0x9   :  { %p1012_p2 = pnand %p1010_p1, %p1007_p0 }
   0xb   :  { %1015 = shalt.err (!%p1012_p2)
}
   0xc   :  { %s1016_s29 = scalar_lea.vmem %s34_s19, 512  ;;  %p1021_p4 = scmp.lt.s32.totalorder %s34_s19, %s34_s19 }
   0xd   :  { %p1017_p3 = scmp.ne.s32.totalorder %s34_s19, %s1016_s29  ;;  %p1022_p5 = scmp.lt.s32.totalorder %s1016_s29, %s1016_s29 }
   0xf   :  { %p1023_p6 = por %p1022_p5, %p1021_p4 }
  0x11   :  { %p1024_p7 = pnand %p1023_p6, %p1017_p3 }
  0x13   :  { %1027 = shalt.err (!%p1024_p7)
}
  0x14   :  { %s1150_s30 = smov 128   ;;  %s1151_s6 = smov 8  }
  0x15   :  { %39 = dma.hbm_to_vmem [thread:$0]  %s1482_s1, 512, %s34_s19, [#allocation6], %s1150_s30, %s1150_s30, %s1151_s6  }
  0x16   :  { %s1028_s11 = scalar_lea.hbm %s1481_s0, 1024 }
  0x17   :  { %p1029_p8 = scmp.ne.s32.totalorder %s1481_s0, %s1028_s11  ;;  %p1032_p9 = scmp.lt.u32.totalorder %s1028_s11, %s1481_s0 }
  0x19   :  { %p1034_p10 = pnand %p1032_p9, %p1029_p8 }
  0x1b   :  { %1037 = shalt.err (!%p1034_p10)
}
  0x1c   :  { %s1038_s16 = scalar_lea.vmem %s1191_s21, 1024  ;;  %p1043_p12 = scmp.lt.s32.totalorder %s1191_s21, %s1191_s21 }
  0x1d   :  { %p1039_p11 = scmp.ne.s32.totalorder %s1191_s21, %s1038_s16  ;;  %p1044_p13 = scmp.lt.s32.totalorder %s1038_s16, %s1038_s16 }
  0x1f   :  { %p1045_p0 = por %p1044_p13, %p1043_p12 }
  0x21   :  { %p1046_p1 = pnand %p1045_p0, %p1039_p11 }
  0x23   :  { %1049 = shalt.err (!%p1046_p1)
}
  0x24   :  { %27 = dma.hbm_to_vmem [thread:$0]  %s1481_s0, 1024, %s1191_s21, [#allocation3], %s1150_s30, %s1150_s30, %s1151_s6  }
  0x25   :  { %s1152_s18 = smov [#allocation7]   ;;  %s1153_s20 = smov [#allocation8]  }
  0x26   :  { %s45_s19 = sshll.u32 %s1152_s18, 4  ;;  %s57_s22 = sshll.u32 %s1153_s20, 4  ;;  %s46_s19 = int_to_ptr.vmem [resolvable:$true] %s45_s19  ;;  %s1228_s22 = int_to_ptr.vmem [resolvable:$true] %s57_s22 }
  0x27   :  { %s1050_s25 = scalar_lea.hbm %s1483_s2, 512 }
  0x28   :  { %p1051_p2 = scmp.ne.s32.totalorder %s1483_s2, %s1050_s25  ;;  %p1054_p3 = scmp.lt.u32.totalorder %s1050_s25, %s1483_s2 }
  0x2a   :  { %p1056_p4 = pnand %p1054_p3, %p1051_p2 }
  0x2c   :  { %1059 = shalt.err (!%p1056_p4)
}
  0x2d   :  { %s1060_s0 = scalar_lea.vmem %s46_s19, 512  ;;  %p1065_p6 = scmp.lt.s32.totalorder %s46_s19, %s46_s19 }
  0x2e   :  { %p1061_p5 = scmp.ne.s32.totalorder %s46_s19, %s1060_s0  ;;  %p1066_p7 = scmp.lt.s32.totalorder %s1060_s0, %s1060_s0 }
  0x30   :  { %p1067_p8 = por %p1066_p7, %p1065_p6 }
  0x32   :  { %p1068_p9 = pnand %p1067_p8, %p1061_p5 }
  0x34   :  { %1071 = shalt.err (!%p1068_p9)
}
  0x35   :  { %51 = dma.hbm_to_vmem [thread:$0]  %s1483_s2, 512, %s46_s19, [#allocation6], %s1150_s30, %s1150_s30, %s1151_s6  }
  0x36   :  { %s1072_s10 = scalar_lea.hbm %s1484_s3, 512 }
  0x37   :  { %p1073_p10 = scmp.ne.s32.totalorder %s1484_s3, %s1072_s10  ;;  %p1076_p11 = scmp.lt.u32.totalorder %s1072_s10, %s1484_s3 }
  0x39   :  { %p1078_p12 = pnand %p1076_p11, %p1073_p10 }
  0x3b   :  { %1081 = shalt.err (!%p1078_p12)
}
  0x3c   :  { %s1082_s15 = scalar_lea.vmem %s1228_s22, 512  ;;  %p1087_p0 = scmp.lt.s32.totalorder %s1228_s22, %s1228_s22 }
  0x3d   :  { %p1083_p13 = scmp.ne.s32.totalorder %s1228_s22, %s1082_s15  ;;  %p1088_p1 = scmp.lt.s32.totalorder %s1082_s15, %s1082_s15 }
  0x3f   :  { %p1089_p2 = por %p1088_p1, %p1087_p0 }
  0x41   :  { %p1090_p3 = pnand %p1089_p2, %p1083_p13 }
  0x43   :  { %1093 = shalt.err (!%p1090_p3)
}
  0x44   :  { %63 = dma.hbm_to_vmem [thread:$0]  %s1484_s3, 512, %s1228_s22, [#allocation9], %s1150_s30, %s1150_s30, %s1151_s6  }
  0x45   :  { %1138 = dma.done.wait [#allocation3], 1024  }
  0x46   :  { %1139 = vsyncadd [#allocation3], 4294966272 }
  0x47   :  { %1140 = dma.done.wait [#allocation6], 1024  }
  0x48   :  { %1141 = vsyncadd [#allocation6], 4294966272 }
  0x49   :  { %1142 = dma.done.wait [#allocation9], 512  }
  0x4a   :  { %1143 = vsyncadd [#allocation9], 4294966784  ;;  %v1154_v0 = vmov 0.0|0.0   ;;  %vm1155_vm0 = vmmov 0   ;;  %v1156_v1 = vmov 0.0   ;;  %v84_v2 = vld [vmem:[#allocation5] sm:$0xff]  ;;  %v203_v32 = vlaneseq }
  0x4b   :  { %951 = vmatprep.subr.bf16.mxu0 %v1154_v0  ;;  %926 = vmatprep.mubr.msk.f32.mxu0 %vm1155_vm0, %v1156_v1  ;;  %v85_v3 = vld [vmem:[#allocation5 + $0x8] sm:$0xff]  ;;  %v86_v4 = vld [vmem:[#allocation5 + $0x10] sm:$0xff]  ;;  %v87_v6 = vld [vmem:[#allocation5 + $0x18] sm:$0xff]  ;;  %vm106_vm1 = vcmask 1041409   ;;  %vm109_vm2 = vcmask 1042434   ;;  %vm112_vm3 = vcmask 1043459  }
  0x4c   :  { %957 = vmatprep.subr.bf16.mxu1 %v1154_v0  ;;  %937 = vmatprep.mubr.msk.f32.mxu1 %vm1155_vm0, %v1156_v1  ;;  %v952_v5 = vpack.c.bf16 %v85_v3, %v84_v2  ;;  %v1271_v7 = vld [vmem:[#allocation2] sm:$0xff]  ;;  %v1273_v8 = vld [vmem:[#allocation2 + $0x8] sm:$0xff]  ;;  %v1275_v9 = vld [vmem:[#allocation2 + $0x10] sm:$0xff]  ;;  %v955_v14 = vpack.c.bf16 %v87_v6, %v86_v4  ;;  %vm115_vm4 = vcmask 1044484   ;;  %vm118_vm5 = vcmask 1045509   ;;  %s1159_s3 = smov [#allocation11]  }
  0x4d   :  { %v1277_v10 = vld [vmem:[#allocation2 + $0x18] sm:$0xff]  ;;  %v1279_v11 = vld [vmem:[#allocation2 + $0x20] sm:$0xff]  ;;  %v104_v12 = vrot.slane %v1271_v7, 7  ;;  %v105_v13 = vrot.slane %v1273_v8, 6  ;;  %v1283_v15 = vld [vmem:[#allocation2 + $0x28] sm:$0xff]  ;;  %v108_v17 = vrot.slane %v1275_v9, 5 }
  0x4e   :  { %953 = vmatpush3.bf16.msra.mxu0 %v952_v5  ;;  %v1285_v16 = vld [vmem:[#allocation2 + $0x30] sm:$0xff]  ;;  %v111_v18 = vrot.slane %v1277_v10, 4  ;;  %v114_v19 = vrot.slane %v1279_v11, 3  ;;  %v117_v21 = vrot.slane %v1283_v15, 2  ;;  %vm121_vm6 = vcmask 1046534   ;;  %v1296_v25 = vld [vmem:[#allocation2 + $0x38] sm:$0xff] }
  0x4f   :  { %954 = vmatprep.subr.bf16.mxu0 %v1154_v0  ;;  %v107_v20 = vsel %vm106_vm1, %v105_v13, %v104_v12  ;;  %v120_v23 = vrot.slane %v1285_v16, 1  ;;  %vm123_vm7 = vcmask 1047559   ;;  %vm125_vm8 = vcmask 261120   ;;  %s885_s30 = sshll.u32 %s1159_s3, 4  ;;  %s886_s30 = int_to_ptr.vmem [resolvable:$true] %s885_s30 }
  0x50   :  { %v110_v22 = vsel %vm109_vm2, %v108_v17, %v107_v20  ;;  %v1157_v30 = vmov 1966171168   ;;  %v1307_v34 = vshrl.u32 %v203_v32, 7  ;;  %vm370_vm9 = vcmask 64512   ;;  %s1094_s6 = scalar_lea.vmem %s886_s30, 128  ;;  %p1099_p5 = scmp.lt.s32.totalorder %s886_s30, %s886_s30 }
  0x51   :  { %v113_v24 = vsel %vm112_vm3, %v111_v18, %v110_v22  ;;  %v201_v31 = vunpack.c.l.s4 %v1157_v30  ;;  %p1095_p4 = scmp.ne.s32.totalorder %s886_s30, %s1094_s6  ;;  %p1100_p6 = scmp.lt.s32.totalorder %s1094_s6, %s1094_s6 }
  0x52   :  { %956 = vmatpush3.bf16.msra.mxu0 %v955_v14  ;;  %v116_v26 = vsel %vm115_vm4, %v114_v19, %v113_v24  ;;  %v1311_v40 = vsub.s32 0, %v1307_v34 }
  0x53   :  { %v119_v27 = vsel %vm118_vm5, %v117_v21, %v116_v26  ;;  %v202_v33 = vunpack.c.0.s8 %v201_v31  ;;  %v329_v21 = vand.u32 127, %v203_v32  ;;  %p1101_p7 = por %p1100_p6, %p1099_p5 }
  0x54   :  { %v122_v28 = vsel %vm121_vm6, %v120_v23, %v119_v27 }
  0x55   :  { %v1303_v29 = vsel %vm123_vm7, %v1296_v25, %v122_v28  ;;  %v205_v35 = vsub.s32 %v202_v33, %v1307_v34  ;;  %v1338_v23 = vsub.s32 %v329_v21, %v1307_v34  ;;  %p1102_p8 = pnand %p1101_p7, %p1095_p4 }
  0x56   :  { %927 = vmatmul.mubr.msk.f32.vlgmr.msra.gmra.mrb[0].mxu0 %vm125_vm8, %v1303_v29 }
 0x129   :  { %v194_v36 = vpop.f32.mrb[0].mxu0 }
 0x12a   :  { %v199_v37 = vcombine.high %v194_v36, %v194_v36  ;;  %v206_v38 = vrot.slane %v194_v36, %v205_v35  ;;  %v928_v39 = vpop.f32.mrb[1].mxu0 }
 0x12c   :  { %v213_v41 = vrot.slane %v199_v37, %v205_v35  ;;  %v214_v42 = vcombine.high %v206_v38, %v206_v38  ;;  %v222_v43 = vrot.slane %v206_v38, %v205_v35 }
 0x12e   :  { %v215_v44 = vcombine.high %v213_v41, %v213_v41  ;;  %v229_v45 = vrot.slane %v213_v41, %v205_v35  ;;  %v236_v46 = vrot.slane %v214_v42, %v205_v35  ;;  %v251_v47 = vrot.slane %v222_v43, %v1311_v40 }
 0x12f   :  { %v244_v48 = vcombine.high %v222_v43, %v222_v43 }
 0x130   :  { %v288_v49 = vmul.f32 %v251_v47, %v1271_v7  ;;  %v255_v50 = vrot.slane %v236_v46, %v1311_v40  ;;  %v246_v51 = vcombine.high %v236_v46, %v236_v46  ;;  %v267_v53 = vrot.slane %v229_v45, %v1311_v40 }
 0x131   :  { %v259_v52 = vrot.slane %v244_v48, %v1311_v40  ;;  %v243_v54 = vrot.slane %v215_v44, %v205_v35  ;;  %v245_v58 = vcombine.high %v229_v45, %v229_v45 }
 0x132   :  { %v296_v55 = vsel %vm125_vm8, %v288_v49, 0.0  ;;  %v289_v56 = vmul.f32 %v255_v50, %v1273_v8  ;;  %v263_v57 = vrot.slane %v246_v51, %v1311_v40  ;;  %v292_v3 = vmul.f32 %v267_v53, %v1279_v11 }
 0x133   :  { %297 = vadd.xlane.f32.xlu0 %v296_v55  ;;  %v290_v59 = vmul.f32 %v259_v52, %v1275_v9  ;;  %v271_v62 = vrot.slane %v243_v54, %v1311_v40  ;;  %v247_v63 = vcombine.high %v243_v54, %v243_v54  ;;  %v275_v4 = vrot.slane %v245_v58, %v1311_v40 }
 0x134   :  { %v291_v61 = vmul.f32 %v263_v57, %v1277_v10  ;;  %v299_v2 = vsel %vm125_vm8, %v289_v56, 0.0  ;;  %v308_v13 = vsel %vm125_vm8, %v292_v3, 0.0  ;;  %v1158_v51 = vmov 0  }
 0x135   :  { %v302_v60 = vsel %vm125_vm8, %v290_v59, 0.0  ;;  %v293_v6 = vmul.f32 %v271_v62, %v1283_v15  ;;  %v279_v12 = vrot.slane %v247_v63, %v1311_v40  ;;  %v294_v14 = vmul.f32 %v275_v4, %v1285_v16  ;;  %985 = vset.pattern.permute.xlu0 %v1158_v51  ;;  %984 = vset.pattern.permute.xlu1 %v1158_v51 }
 0x136   :  { %303 = vadd.xlane.f32.xlu1 %v302_v60  ;;  %v305_v5 = vsel %vm125_vm8, %v291_v61, 0.0  ;;  %v381_v52 = vsub.s32 1, %v1307_v34  ;;  %v385_v53 = vsub.s32 2, %v1307_v34  ;;  %v389_v54 = vsub.s32 3, %v1307_v34 }
 0x137   :  { %300 = vadd.xlane.f32.xlu0 %v299_v2  ;;  %v311_v17 = vsel %vm125_vm8, %v293_v6, 0.0  ;;  %v295_v18 = vmul.f32 %v279_v12, %v1296_v25  ;;  %v314_v19 = vsel %vm125_vm8, %v294_v14, 0.0  ;;  %v393_v59 = vsub.s32 4, %v1307_v34 }
 0x138   :  { %v397_v4 = vsub.s32 5, %v1307_v34 }
 0x139   :  { %v317_v20 = vsel %vm125_vm8, %v295_v18, 0.0 }
 0x13a   :  { %306 = vadd.xlane.f32.xlu1 %v305_v5 }
 0x13b   :  { %309 = vadd.xlane.f32.xlu0 %v308_v13  ;;  %v401_v13 = vsub.s32 6, %v1307_v34 }
 0x13e   :  { %312 = vadd.xlane.f32.xlu1 %v311_v17 }
 0x13f   :  { %315 = vadd.xlane.f32.xlu0 %v314_v19  ;;  %v405_v19 = vsub.s32 7, %v1307_v34 }
 0x142   :  { %318 = vadd.xlane.f32.xlu1 %v317_v20 }
 0x1c0   :  { %v298_v22 = vpop.xlane.xlu0 %297 }
 0x1c1   :  { %v333_v27 = vrot.slane %v298_v22, %v1338_v23 }
 0x1c3   :  { %v304_v24 = vpop.xlane.xlu1 %303 }
 0x1c4   :  { %v301_v26 = vpop.xlane.xlu0 %300  ;;  %v341_v30 = vrot.slane %v304_v24, %v1338_v23 }
 0x1c5   :  { %v337_v28 = vrot.slane %v301_v26, %v1338_v23 }
 0x1c7   :  { %v362_v31 = vsel %vm106_vm1, %v337_v28, %v333_v27  ;;  %v307_v33 = vpop.xlane.xlu1 %306 }
 0x1c8   :  { %v363_v35 = vsel %vm109_vm2, %v341_v30, %v362_v31  ;;  %v345_v36 = vrot.slane %v307_v33, %v1338_v23  ;;  %v310_v32 = vpop.xlane.xlu0 %309 }
 0x1c9   :  { %v349_v37 = vrot.slane %v310_v32, %v1338_v23 }
 0x1ca   :  { %v364_v38 = vsel %vm112_vm3, %v345_v36, %v363_v35 }
 0x1cb   :  { %v365_v39 = vsel %vm115_vm4, %v349_v37, %v364_v38  ;;  %v313_v41 = vpop.xlane.xlu1 %312 }
 0x1cc   :  { %v353_v42 = vrot.slane %v313_v41, %v1338_v23  ;;  %v316_v43 = vpop.xlane.xlu0 %315 }
 0x1cd   :  { %v357_v44 = vrot.slane %v316_v43, %v1338_v23 }
 0x1ce   :  { %v366_v45 = vsel %vm118_vm5, %v353_v42, %v365_v39 }
 0x1cf   :  { %v319_v46 = vpop.xlane.xlu1 %318  ;;  %v367_v47 = vsel %vm121_vm6, %v357_v44, %v366_v45 }
 0x1d0   :  { %v361_v48 = vrot.slane %v319_v46, %v1338_v23 }
 0x1d2   :  { %v368_v49 = vsel %vm123_vm7, %v361_v48, %v367_v47 }
 0x1d3   :  { %v371_v50 = vsel %vm370_vm9, %v368_v49, -inf }
 0x1d4   :  { %372 = vmax.xlane.f32.xlu0 %v371_v50 }
 0x261   :  { %v373_v55 = vpop.xlane.xlu0 %372 }
 0x262   :  { %v378_v56 = vrot.slane %v373_v55, %v1311_v40  ;;  %v382_v57 = vrot.slane %v373_v55, %v381_v52  ;;  %v386_v58 = vrot.slane %v373_v55, %v385_v53  ;;  %v390_v60 = vrot.slane %v373_v55, %v389_v54 }
 0x263   :  { %v394_v5 = vrot.slane %v373_v55, %v393_v59  ;;  %v398_v14 = vrot.slane %v373_v55, %v397_v4  ;;  %v402_v20 = vrot.slane %v373_v55, %v401_v13  ;;  %v406_v27 = vrot.slane %v373_v55, %v405_v19 }
 0x264   :  { %v415_v61 = vsub.f32 %v298_v22, %v378_v56  ;;  %v416_v62 = vsub.f32 %v301_v26, %v382_v57  ;;  %v417_v63 = vsub.f32 %v304_v24, %v386_v58  ;;  %v418_v6 = vsub.f32 %v307_v33, %v390_v60 }
 0x265   :  { %v419_v17 = vsub.f32 %v310_v32, %v394_v5  ;;  %v420_v21 = vsub.f32 %v313_v41, %v398_v14  ;;  %v421_v28 = vsub.f32 %v316_v43, %v402_v20  ;;  %v422_v33 = vsub.f32 %v319_v46, %v406_v27 }
 0x266   :  { %v423_v2 = vmul.f32 1.442695, %v415_v61  ;;  %v425_v3 = vmul.f32 1.442695, %v416_v62  ;;  %v427_v12 = vmul.f32 1.442695, %v417_v63 }
 0x267   :  { %v429_v18 = vmul.f32 1.442695, %v418_v6  ;;  %v431_v22 = vmul.f32 1.442695, %v419_v17  ;;  %v433_v30 = vmul.f32 1.442695, %v420_v21 }
 0x268   :  { %986 = vpow2.f32 %v423_v2  ;;  %v435_v35 = vmul.f32 1.442695, %v421_v28  ;;  %v437_v32 = vmul.f32 1.442695, %v422_v33 }
 0x269   :  { %988 = vpow2.f32 %v425_v3 }
 0x26a   :  { %990 = vpow2.f32 %v427_v12 }
 0x26b   :  { %992 = vpow2.f32 %v429_v18 }
 0x26c   :  { %994 = vpow2.f32 %v431_v22 }
 0x26d   :  { %996 = vpow2.f32 %v433_v30 }
 0x26e   :  { %998 = vpow2.f32 %v435_v35 }
 0x26f   :  { %1000 = vpow2.f32 %v437_v32 }
 0x272   :  { %v987_v24 = vpop.eup %986 }
 0x273   :  { %v989_v26 = vpop.eup %988  ;;  %448 = vperm.xlu1 %984, %v987_v24  }
 0x274   :  { %451 = vperm.xlu0 %985, %v989_v26   ;;  %v991_v31 = vpop.eup %990 }
 0x275   :  { %v993_v36 = vpop.eup %992 }
 0x276   :  { %v995_v37 = vpop.eup %994 }
 0x277   :  { %454 = vperm.xlu1 %984, %v991_v31   ;;  %v997_v38 = vpop.eup %996 }
 0x278   :  { %v999_v39 = vpop.eup %998 }
 0x279   :  { %v1001_v41 = vpop.eup %1000 }
 0x27b   :  { %457 = vperm.xlu1 %984, %v993_v36  }
 0x27f   :  { %460 = vperm.xlu1 %984, %v995_v37  }
 0x283   :  { %463 = vperm.xlu1 %984, %v997_v38  }
 0x287   :  { %466 = vperm.xlu1 %984, %v999_v39  }
 0x28b   :  { %469 = vperm.xlu1 %984, %v1001_v41  }
 0x2f2   :  { %v449_v42 = vpop.permute.xlu1 %448 }
 0x2f3   :  { %v452_v46 = vpop.permute.xlu0 %451  ;;  %v474_v49 = vrot.slane %v449_v42, %v1338_v23 }
 0x2f4   :  { %v478_v48 = vrot.slane %v452_v46, %v1338_v23 }
 0x2f6   :  { %v455_v43 = vpop.permute.xlu1 %454  ;;  %v503_v57 = vsel %vm106_vm1, %v478_v48, %v474_v49 }
 0x2f7   :  { %v482_v50 = vrot.slane %v455_v43, %v1338_v23  ;;  %v90_v43 = vld [vmem:[#allocation7 + $0x10] sm:$0xff] }
 0x2f9   :  { %v504_v60 = vsel %vm109_vm2, %v482_v50, %v503_v57 }
 0x2fa   :  { %v458_v44 = vpop.permute.xlu1 %457 }
 0x2fb   :  { %v486_v51 = vrot.slane %v458_v44, %v1338_v23 }
 0x2fd   :  { %v505_v62 = vsel %vm112_vm3, %v486_v51, %v504_v60 }
 0x2fe   :  { %v461_v45 = vpop.permute.xlu1 %460 }
 0x2ff   :  { %v490_v55 = vrot.slane %v461_v45, %v1338_v23 }
 0x301   :  { %v506_v63 = vsel %vm115_vm4, %v490_v55, %v505_v62 }
 0x302   :  { %v464_v47 = vpop.permute.xlu1 %463 }
 0x303   :  { %v494_v58 = vrot.slane %v464_v47, %v1338_v23 }
 0x305   :  { %v507_v3 = vsel %vm118_vm5, %v494_v58, %v506_v63 }
 0x306   :  { %v467_v56 = vpop.permute.xlu1 %466 }
 0x307   :  { %v498_v61 = vrot.slane %v467_v56, %v1338_v23 }
 0x309   :  { %v508_v6 = vsel %vm121_vm6, %v498_v61, %v507_v3 }
 0x30a   :  { %v470_v2 = vpop.permute.xlu1 %469 }
 0x30b   :  { %v502_v5 = vrot.slane %v470_v2, %v1338_v23 }
 0x30d   :  { %v509_v12 = vsel %vm123_vm7, %v502_v5, %v508_v6 }
 0x30e   :  { %v511_v14 = vsel %vm370_vm9, %v509_v12, 0.0 }
 0x30f   :  { %512 = vadd.xlane.f32.xlu1 %v511_v14 }
 0x39c   :  { %v513_v17 = vpop.xlane.xlu1 %512 }
 0x39d   :  { %1002 = vrcp.f32 %v513_v17 }
 0x3a7   :  { %v1003_v18 = vpop.eup %1002 }
 0x3a8   :  { %v519_v20 = vrot.slane %v1003_v18, %v1311_v40  ;;  %v523_v22 = vrot.slane %v1003_v18, %v381_v52  ;;  %v527_v28 = vrot.slane %v1003_v18, %v385_v53  ;;  %v531_v33 = vrot.slane %v1003_v18, %v389_v54 }
 0x3a9   :  { %v535_v32 = vrot.slane %v1003_v18, %v393_v59  ;;  %v539_v52 = vrot.slane %v1003_v18, %v397_v4  ;;  %v543_v53 = vrot.slane %v1003_v18, %v401_v13  ;;  %v547_v54 = vrot.slane %v1003_v18, %v405_v19  ;;  %v93_v59 = vld [vmem:[#allocation8 + $0x8] sm:$0xff]  ;;  %v94_v4 = vld [vmem:[#allocation8 + $0x10] sm:$0xff]  ;;  %v88_v13 = vld [vmem:[#allocation7] sm:$0xff] }
 0x3aa   :  { %v556_v21 = vmul.f32 %v987_v24, %v519_v20  ;;  %v557_v27 = vmul.f32 %v989_v26, %v523_v22  ;;  %v558_v30 = vmul.f32 %v991_v31, %v527_v28  ;;  %v559_v35 = vmul.f32 %v993_v36, %v531_v33  ;;  %v92_v36 = vld [vmem:[#allocation8] sm:$0xff]  ;;  %v91_v19 = vld [vmem:[#allocation7 + $0x18] sm:$0xff] }
 0x3ab   :  { %v560_v40 = vmul.f32 %v995_v37, %v535_v32  ;;  %v561_v24 = vmul.f32 %v997_v38, %v539_v52  ;;  %v562_v26 = vmul.f32 %v999_v39, %v543_v53  ;;  %v563_v31 = vmul.f32 %v1001_v41, %v547_v54  ;;  %v95_v37 = vld [vmem:[#allocation8 + $0x18] sm:$0xff]  ;;  %v89_v39 = vld [vmem:[#allocation7 + $0x8] sm:$0xff] }
 0x3ac   :  { %566 = vperm.xlu0 %985, %v556_v21   ;;  %v958_v42 = vpack.c.bf16 %v93_v59, %v92_v36  ;;  %v961_v38 = vpack.c.bf16 %v95_v37, %v94_v4  ;;  %v964_v34 = vpack.c.bf16 %v89_v39, %v88_v13  ;;  %v967_v41 = vpack.c.bf16 %v91_v19, %v90_v43 }
 0x3ae   :  { %959 = vmatpush3.bf16.msra.mxu1 %v958_v42 }
 0x3af   :  { %960 = vmatprep.subr.bf16.mxu1 %v1154_v0 }
 0x3b0   :  { %571 = vperm.xlu0 %985, %v557_v27  }
 0x3b2   :  { %962 = vmatpush3.bf16.msra.mxu1 %v961_v38 }
 0x3b3   :  { %963 = vmatprep.subr.bf16.mxu1 %v1154_v0 }
 0x3b4   :  { %576 = vperm.xlu0 %985, %v558_v30  }
 0x3b5   :  { %938 = vmatmul.mubr.msk.f32.vlgmr.msra.gmra.mrb[0].mxu1 %vm125_vm8, %v1303_v29 }
 0x3b6   :  { %965 = vmatpush3.bf16.msra.mxu1 %v964_v34  ;;  %948 = vmatprep.mubr.msk.f32.mxu1 %vm1155_vm0, %v1156_v1 }
 0x3b7   :  { %966 = vmatprep.subr.bf16.mxu1 %v1154_v0 }
 0x3b8   :  { %581 = vperm.xlu0 %985, %v559_v35  }
 0x3ba   :  { %968 = vmatpush3.bf16.msra.mxu1 %v967_v41 }
 0x3bc   :  { %586 = vperm.xlu0 %985, %v560_v40  }
 0x3c0   :  { %591 = vperm.xlu0 %985, %v561_v24  }
 0x3c4   :  { %596 = vperm.xlu0 %985, %v562_v26  }
 0x3c8   :  { %601 = vperm.xlu0 %985, %v563_v31  }
 0x42b   :  { %v567_v44 = vpop.permute.xlu0 %566 }
 0x42c   :  { %v604_v47 = vmul.f32 %v567_v44, %v1271_v7  ;;  %v830_v12 = vrot.slane %v567_v44, %v1338_v23 }
 0x42e   :  { %v612_v29 = vsel %vm125_vm8, %v604_v47, 0.0 }
 0x42f   :  { %v572_v45 = vpop.permute.xlu0 %571  ;;  %v613_v56 = vrot.slane %v612_v29, 4 }
 0x430   :  { %v605_v46 = vmul.f32 %v572_v45, %v1273_v8  ;;  %v834_v6 = vrot.slane %v572_v45, %v1338_v23 }
 0x432   :  { %v619_v50 = vsel %vm125_vm8, %v605_v46, 0.0  ;;  %v859_v35 = vsel %vm106_vm1, %v834_v6, %v830_v12 }
 0x433   :  { %v577_v48 = vpop.permute.xlu0 %576  ;;  %v620_v0 = vrot.slane %v619_v50, 4 }
 0x434   :  { %v606_v49 = vmul.f32 %v577_v48, %v1275_v9  ;;  %v614_v9 = vadd.f32 %v613_v56, %v612_v29  ;;  %v838_v17 = vrot.slane %v577_v48, %v1338_v23 }
 0x435   :  { %v621_v61 = vadd.f32 %v620_v0, %v619_v50 }
 0x436   :  { %v626_v51 = vsel %vm125_vm8, %v606_v49, 0.0  ;;  %v615_v20 = vrot.slane %v614_v9, 2  ;;  %v860_v24 = vsel %vm109_vm2, %v838_v17, %v859_v35 }
 0x437   :  { %v582_v55 = vpop.permute.xlu0 %581  ;;  %v627_v57 = vrot.slane %v626_v51, 4  ;;  %v622_v14 = vrot.slane %v621_v61, 2 }
 0x438   :  { %v607_v1 = vmul.f32 %v582_v55, %v1277_v10  ;;  %v842_v21 = vrot.slane %v582_v55, %v1338_v23  ;;  %v616_v54 = vadd.f32 %v615_v20, %v614_v9 }
 0x439   :  { %v628_v62 = vadd.f32 %v627_v57, %v626_v51  ;;  %v623_v52 = vadd.f32 %v622_v14, %v621_v61 }
 0x43a   :  { %v633_v58 = vsel %vm125_vm8, %v607_v1, 0.0  ;;  %v861_v36 = vsel %vm112_vm3, %v842_v21, %v860_v24  ;;  %v617_v49 = vrot.slane %v616_v54, 1 }
 0x43b   :  { %v634_v8 = vrot.slane %v633_v58, 4  ;;  %v587_v60 = vpop.permute.xlu0 %586  ;;  %v624_v19 = vrot.slane %v623_v52, 1 }
 0x43c   :  { %v608_v7 = vmul.f32 %v587_v60, %v1279_v11  ;;  %v629_v11 = vrot.slane %v628_v62, 2  ;;  %v846_v28 = vrot.slane %v587_v60, %v1338_v23 }
 0x43d   :  { %v635_v2 = vadd.f32 %v634_v8, %v633_v58  ;;  %v618_v58 = vadd.f32 %v617_v49, %v616_v54 }
 0x43e   :  { %v640_v63 = vsel %vm125_vm8, %v608_v7, 0.0  ;;  %v630_v31 = vadd.f32 %v629_v11, %v628_v62  ;;  %v862_v4 = vsel %vm115_vm4, %v846_v28, %v861_v36 }
 0x43f   :  { %v641_v3 = vrot.slane %v640_v63, 4  ;;  %v592_v5 = vpop.permute.xlu0 %591  ;;  %v636_v27 = vrot.slane %v635_v2, 2 }
 0x440   :  { %v609_v10 = vmul.f32 %v592_v5, %v1283_v15  ;;  %v850_v32 = vrot.slane %v592_v5, %v1338_v23  ;;  %v631_v46 = vrot.slane %v630_v31, 1 }
 0x441   :  { %v642_v18 = vadd.f32 %v641_v3, %v640_v63  ;;  %v637_v42 = vadd.f32 %v636_v27, %v635_v2 }
 0x442   :  { %v647_v22 = vsel %vm125_vm8, %v609_v10, 0.0  ;;  %v632_v57 = vadd.f32 %v631_v46, %v630_v31 }
 0x443   :  { %v648_v30 = vrot.slane %v647_v22, 4  ;;  %v597_v33 = vpop.permute.xlu0 %596  ;;  %v643_v15 = vrot.slane %v642_v18, 2  ;;  %v638_v50 = vrot.slane %v637_v42, 1 }
 0x444   :  { %v610_v40 = vmul.f32 %v597_v33, %v1285_v16  ;;  %v854_v26 = vrot.slane %v597_v33, %v1338_v23  ;;  %v863_v16 = vsel %vm118_vm5, %v850_v32, %v862_v4 }
 0x445   :  { %v649_v53 = vadd.f32 %v648_v30, %v647_v22  ;;  %v644_v39 = vadd.f32 %v643_v15, %v642_v18  ;;  %v639_v8 = vadd.f32 %v638_v50, %v637_v42 }
 0x446   :  { %v654_v59 = vsel %vm125_vm8, %v610_v40, 0.0  ;;  %v864_v45 = vsel %vm121_vm6, %v854_v26, %v863_v16 }
 0x447   :  { %v650_v37 = vrot.slane %v649_v53, 2  ;;  %v655_v38 = vrot.slane %v654_v59, 4  ;;  %v602_v13 = vpop.permute.xlu0 %601  ;;  %v645_v55 = vrot.slane %v644_v39, 1 }
 0x448   :  { %v611_v43 = vmul.f32 %v602_v13, %v1296_v25  ;;  %v858_v34 = vrot.slane %v602_v13, %v1338_v23  ;;  %v625_v25 = vadd.f32 %v624_v19, %v623_v52 }
 0x449   :  { %v651_v41 = vadd.f32 %v650_v37, %v649_v53  ;;  %v656_v44 = vadd.f32 %v655_v38, %v654_v59  ;;  %v646_v61 = vadd.f32 %v645_v55, %v644_v39 }
 0x44a   :  { %v661_v47 = vsel %vm125_vm8, %v611_v43, 0.0  ;;  %v865_v48 = vsel %vm123_vm7, %v858_v34, %v864_v45  ;;  %v746_v9 = vsel %vm106_vm1, %v625_v25, %v618_v58 }
 0x44b   :  { %v657_v29 = vrot.slane %v656_v44, 2  ;;  %v662_v51 = vrot.slane %v661_v47, 4  ;;  %v867_v1 = vsel %vm370_vm9, %v865_v48, 0.0  ;;  %v652_v0 = vrot.slane %v651_v41, 1 }
 0x44c   :  { %868 = vst [vmem:[#allocation11] sm:$0xff] %v867_v1  ;;  %v747_v2 = vsel %vm109_vm2, %v632_v57, %v746_v9 }
 0x44d   :  { %v658_v23 = vadd.f32 %v657_v29, %v656_v44  ;;  %v663_v56 = vadd.f32 %v662_v51, %v661_v47  ;;  %v653_v62 = vadd.f32 %v652_v0, %v651_v41  ;;  %v748_v5 = vsel %vm112_vm3, %v639_v8, %v747_v2 }
 0x44e   :  { %v749_v10 = vsel %vm115_vm4, %v646_v61, %v748_v5 }
 0x44f   :  { %v659_v60 = vrot.slane %v658_v23, 1  ;;  %v664_v7 = vrot.slane %v663_v56, 2  ;;  %v750_v14 = vsel %vm118_vm5, %v653_v62, %v749_v10 }
 0x451   :  { %v665_v63 = vadd.f32 %v664_v7, %v663_v56  ;;  %v660_v3 = vadd.f32 %v659_v60, %v658_v23 }
 0x453   :  { %v666_v6 = vrot.slane %v665_v63, 1  ;;  %v751_v17 = vsel %vm121_vm6, %v660_v3, %v750_v14 }
 0x455   :  { %v667_v12 = vadd.f32 %v666_v6, %v665_v63 }
 0x457   :  { %v752_v18 = vsel %vm123_vm7, %v667_v12, %v751_v17 }
 0x458   :  { %949 = vmatmul.mubr.msk.f32.vlgmr.msra.gmra.mrb[0].mxu1 %vm125_vm8, %v752_v18 }
 0x459   :  { %1105 = shalt.err (!%p1102_p8)
}
 0x45a   :  { %s1106_s18 = scalar_lea.hbm %s1486_s5, 128 }
 0x45b   :  { %p1107_p9 = scmp.ne.s32.totalorder %s1486_s5, %s1106_s18  ;;  %p1110_p10 = scmp.lt.u32.totalorder %s1106_s18, %s1486_s5 }
 0x45d   :  { %p1112_p11 = pnand %p1110_p10, %p1107_p9 }
 0x45f   :  { %1115 = shalt.err (!%p1112_p11)
}
 0x460   :  { %888 = dma.vmem_to_hbm [thread:$0]  %s886_s30, 128, %s1486_s5, [#allocation12]  }
 0x461   :  { %s1160_s26 = smov [#allocation10]  }
 0x462   :  { %s875_s27 = sshll.u32 %s1160_s26, 4  ;;  %s876_s27 = int_to_ptr.vmem [resolvable:$true] %s875_s27 }
 0x463   :  { %s1116_s28 = scalar_lea.vmem %s876_s27, 128  ;;  %p1121_p13 = scmp.lt.s32.totalorder %s876_s27, %s876_s27 }
 0x464   :  { %p1117_p12 = scmp.ne.s32.totalorder %s876_s27, %s1116_s28  ;;  %p1122_p0 = scmp.lt.s32.totalorder %s1116_s28, %s1116_s28 }
 0x466   :  { %p1123_p1 = por %p1122_p0, %p1121_p13 }
 0x468   :  { %p1124_p2 = pnand %p1123_p1, %p1117_p12 }
 0x52b   :  { %v821_v20 = vpop.f32.mrb[0].mxu1 }
 0x52c   :  { %1004 = vtanh.f32 %v821_v20  ;;  %v950_v11 = vpop.f32.mrb[1].mxu1 }
 0x536   :  { %v1005_v21 = vpop.eup %1004 }
 0x537   :  { %826 = vst.msk [vmem:[#allocation10] sm:$0xff] %vm125_vm8, %v1005_v21 }
 0x538   :  { %1127 = shalt.err (!%p1124_p2)
}
 0x539   :  { %s1128_s5 = scalar_lea.hbm %s1485_s4, 128 }
 0x53a   :  { %p1129_p3 = scmp.ne.s32.totalorder %s1485_s4, %s1128_s5  ;;  %p1132_p4 = scmp.lt.u32.totalorder %s1128_s5, %s1485_s4 }
 0x53c   :  { %p1134_p5 = pnand %p1132_p4, %p1129_p3 }
 0x53e   :  { %1137 = shalt.err (!%p1134_p5)
}
 0x53f   :  { %878 = dma.vmem_to_hbm [thread:$0]  %s876_s27, 128, %s1485_s4, [#allocation4]  }
 0x540   :  { %1144 = dma.done.wait [#allocation4], 128  }
 0x541   :  { %1145 = vsyncadd [#allocation4], 4294967168 }
 0x542   :  { %1146 = dma.done.wait [#allocation12], 128  }
 0x543   :  { %1147 = vsyncadd [#allocation12], 4294967168 }
 0x544   :  { %895 = vsyncpa [#allocation3], 1 }
 0x545   :  { %896 = vsyncpa [#allocation6], 1 }
 0x546   :  { %897 = vsyncpa [#allocation9], 1 }
 0x547   :  { %898 = vsyncpa [#allocation4], 1 }
 0x548   :  { %899 = vsyncpa [#allocation12], 1 }

// kernel: tpu_custom_call.1
= control target key start
LH: loop header
LB: loop body
LE: loop exit
PB: predicated region body
PF: predicated region fallthrough
CT: control target
= control target key end

     0   :  { %11 = vsyncpa [#allocation3], 0  ;;  %s1481_s0 = inlined_call_operand.hbm [shape: f32[8,8,32], index: 0, kind: input, shape index: {}]   ;;  %s1482_s1 = inlined_call_operand.hbm [shape: f32[32,32], index: 1, kind: input, shape index: {}]   ;;  %s1483_s2 = inlined_call_operand.hbm [shape: f32[32,32], index: 2, kind: input, shape index: {}]   ;;  %s1484_s3 = inlined_call_operand.hbm [shape: f32[32,32], index: 3, kind: input, shape index: {}]   ;;  %s1485_s4 = inlined_call_operand.hbm [shape: f32[8,32], index: 4, kind: output, shape index: {0}]   ;;  %s1486_s5 = inlined_call_operand.hbm [shape: f32[8,128], index: 5, kind: output, shape index: {1}]  }
   0x1   :  { %12 = vsyncpa [#allocation6], 0 }
   0x2   :  { %13 = vsyncpa [#allocation9], 0 }
   0x3   :  { %14 = vsyncpa [#allocation4], 0 }
   0x4   :  { %15 = vsyncpa [#allocation12], 0  ;;  %s1148_s18 = smov [#allocation5]   ;;  %s1149_s20 = smov [#allocation2]  }
   0x5   :  { %s33_s19 = sshll.u32 %s1148_s18, 4  ;;  %s21_s21 = sshll.u32 %s1149_s20, 4  ;;  %s34_s19 = int_to_ptr.vmem [resolvable:$true] %s33_s19  ;;  %s1191_s21 = int_to_ptr.vmem [resolvable:$true] %s21_s21 }
   0x6   :  { %s1006_s24 = scalar_lea.hbm %s1482_s1, 512 }
   0x7   :  { %p1007_p0 = scmp.ne.s32.totalorder %s1482_s1, %s1006_s24  ;;  %p1010_p1 = scmp.lt.u32.totalorder %s1006_s24, %s1482_s1 }
   0x9   :  { %p1012_p2 = pnand %p1010_p1, %p1007_p0 }
   0xb   :  { %1015 = shalt.err (!%p1012_p2)
}
   0xc   :  { %s1016_s29 = scalar_lea.vmem %s34_s19, 512  ;;  %p1021_p4 = scmp.lt.s32.totalorder %s34_s19, %s34_s19 }
   0xd   :  { %p1017_p3 = scmp.ne.s32.totalorder %s34_s19, %s1016_s29  ;;  %p1022_p5 = scmp.lt.s32.totalorder %s1016_s29, %s1016_s29 }
   0xf   :  { %p1023_p6 = por %p1022_p5, %p1021_p4 }
  0x11   :  { %p1024_p7 = pnand %p1023_p6, %p1017_p3 }
  0x13   :  { %1027 = shalt.err (!%p1024_p7)
}
  0x14   :  { %s1150_s30 = smov 128   ;;  %s1151_s6 = smov 8  }
  0x15   :  { %39 = dma.hbm_to_vmem [thread:$0]  %s1482_s1, 512, %s34_s19, [#allocation6], %s1150_s30, %s1150_s30, %s1151_s6  }
  0x16   :  { %s1028_s11 = scalar_lea.hbm %s1481_s0, 1024 }
  0x17   :  { %p1029_p8 = scmp.ne.s32.totalorder %s1481_s0, %s1028_s11  ;;  %p1032_p9 = scmp.lt.u32.totalorder %s1028_s11, %s1481_s0 }
  0x19   :  { %p1034_p10 = pnand %p1032_p9, %p1029_p8 }
  0x1b   :  { %1037 = shalt.err (!%p1034_p10)
}
  0x1c   :  { %s1038_s16 = scalar_lea.vmem %s1191_s21, 1024  ;;  %p1043_p12 = scmp.lt.s32.totalorder %s1191_s21, %s1191_s21 }
  0x1d   :  { %p1039_p11 = scmp.ne.s32.totalorder %s1191_s21, %s1038_s16  ;;  %p1044_p13 = scmp.lt.s32.totalorder %s1038_s16, %s1038_s16 }
  0x1f   :  { %p1045_p0 = por %p1044_p13, %p1043_p12 }
  0x21   :  { %p1046_p1 = pnand %p1045_p0, %p1039_p11 }
  0x23   :  { %1049 = shalt.err (!%p1046_p1)
}
  0x24   :  { %27 = dma.hbm_to_vmem [thread:$0]  %s1481_s0, 1024, %s1191_s21, [#allocation3], %s1150_s30, %s1150_s30, %s1151_s6  }
  0x25   :  { %s1152_s18 = smov [#allocation7]   ;;  %s1153_s20 = smov [#allocation8]  }
  0x26   :  { %s45_s19 = sshll.u32 %s1152_s18, 4  ;;  %s57_s22 = sshll.u32 %s1153_s20, 4  ;;  %s46_s19 = int_to_ptr.vmem [resolvable:$true] %s45_s19  ;;  %s1228_s22 = int_to_ptr.vmem [resolvable:$true] %s57_s22 }
  0x27   :  { %s1050_s25 = scalar_lea.hbm %s1483_s2, 512 }
  0x28   :  { %p1051_p2 = scmp.ne.s32.totalorder %s1483_s2, %s1050_s25  ;;  %p1054_p3 = scmp.lt.u32.totalorder %s1050_s25, %s1483_s2 }
  0x2a   :  { %p1056_p4 = pnand %p1054_p3, %p1051_p2 }
  0x2c   :  { %1059 = shalt.err (!%p1056_p4)
}
  0x2d   :  { %s1060_s0 = scalar_lea.vmem %s46_s19, 512  ;;  %p1065_p6 = scmp.lt.s32.totalorder %s46_s19, %s46_s19 }
  0x2e   :  { %p1061_p5 = scmp.ne.s32.totalorder %s46_s19, %s1060_s0  ;;  %p1066_p7 = scmp.lt.s32.totalorder %s1060_s0, %s1060_s0 }
  0x30   :  { %p1067_p8 = por %p1066_p7, %p1065_p6 }
  0x32   :  { %p1068_p9 = pnand %p1067_p8, %p1061_p5 }
  0x34   :  { %1071 = shalt.err (!%p1068_p9)
}
  0x35   :  { %51 = dma.hbm_to_vmem [thread:$0]  %s1483_s2, 512, %s46_s19, [#allocation6], %s1150_s30, %s1150_s30, %s1151_s6  }
  0x36   :  { %s1072_s10 = scalar_lea.hbm %s1484_s3, 512 }
  0x37   :  { %p1073_p10 = scmp.ne.s32.totalorder %s1484_s3, %s1072_s10  ;;  %p1076_p11 = scmp.lt.u32.totalorder %s1072_s10, %s1484_s3 }
  0x39   :  { %p1078_p12 = pnand %p1076_p11, %p1073_p10 }
  0x3b   :  { %1081 = shalt.err (!%p1078_p12)
}
  0x3c   :  { %s1082_s15 = scalar_lea.vmem %s1228_s22, 512  ;;  %p1087_p0 = scmp.lt.s32.totalorder %s1228_s22, %s1228_s22 }
  0x3d   :  { %p1083_p13 = scmp.ne.s32.totalorder %s1228_s22, %s1082_s15  ;;  %p1088_p1 = scmp.lt.s32.totalorder %s1082_s15, %s1082_s15 }
  0x3f   :  { %p1089_p2 = por %p1088_p1, %p1087_p0 }
  0x41   :  { %p1090_p3 = pnand %p1089_p2, %p1083_p13 }
  0x43   :  { %1093 = shalt.err (!%p1090_p3)
}
  0x44   :  { %63 = dma.hbm_to_vmem [thread:$0]  %s1484_s3, 512, %s1228_s22, [#allocation9], %s1150_s30, %s1150_s30, %s1151_s6  }
  0x45   :  { %1138 = dma.done.wait [#allocation3], 1024  }
  0x46   :  { %1139 = vsyncadd [#allocation3], 4294966272 }
  0x47   :  { %1140 = dma.done.wait [#allocation6], 1024  }
  0x48   :  { %1141 = vsyncadd [#allocation6], 4294966272 }
  0x49   :  { %1142 = dma.done.wait [#allocation9], 512  }
  0x4a   :  { %1143 = vsyncadd [#allocation9], 4294966784  ;;  %v1154_v0 = vmov 0.0|0.0   ;;  %vm1155_vm0 = vmmov 0   ;;  %v1156_v1 = vmov 0.0   ;;  %v84_v2 = vld [vmem:[#allocation5] sm:$0xff]  ;;  %v203_v32 = vlaneseq }
  0x4b   :  { %951 = vmatprep.subr.bf16.mxu0 %v1154_v0  ;;  %926 = vmatprep.mubr.msk.f32.mxu0 %vm1155_vm0, %v1156_v1  ;;  %v85_v3 = vld [vmem:[#allocation5 + $0x8] sm:$0xff]  ;;  %v86_v4 = vld [vmem:[#allocation5 + $0x10] sm:$0xff]  ;;  %v87_v6 = vld [vmem:[#allocation5 + $0x18] sm:$0xff]  ;;  %vm106_vm1 = vcmask 1041409   ;;  %vm109_vm2 = vcmask 1042434   ;;  %vm112_vm3 = vcmask 1043459  }
  0x4c   :  { %957 = vmatprep.subr.bf16.mxu1 %v1154_v0  ;;  %937 = vmatprep.mubr.msk.f32.mxu1 %vm1155_vm0, %v1156_v1  ;;  %v952_v5 = vpack.c.bf16 %v85_v3, %v84_v2  ;;  %v1271_v7 = vld [vmem:[#allocation2] sm:$0xff]  ;;  %v1273_v8 = vld [vmem:[#allocation2 + $0x8] sm:$0xff]  ;;  %v1275_v9 = vld [vmem:[#allocation2 + $0x10] sm:$0xff]  ;;  %v955_v14 = vpack.c.bf16 %v87_v6, %v86_v4  ;;  %vm115_vm4 = vcmask 1044484   ;;  %vm118_vm5 = vcmask 1045509   ;;  %s1159_s3 = smov [#allocation11]  }
  0x4d   :  { %v1277_v10 = vld [vmem:[#allocation2 + $0x18] sm:$0xff]  ;;  %v1279_v11 = vld [vmem:[#allocation2 + $0x20] sm:$0xff]  ;;  %v104_v12 = vrot.slane %v1271_v7, 7  ;;  %v105_v13 = vrot.slane %v1273_v8, 6  ;;  %v1283_v15 = vld [vmem:[#allocation2 + $0x28] sm:$0xff]  ;;  %v108_v17 = vrot.slane %v1275_v9, 5 }
  0x4e   :  { %953 = vmatpush3.bf16.msra.mxu0 %v952_v5  ;;  %v1285_v16 = vld [vmem:[#allocation2 + $0x30] sm:$0xff]  ;;  %v111_v18 = vrot.slane %v1277_v10, 4  ;;  %v114_v19 = vrot.slane %v1279_v11, 3  ;;  %v117_v21 = vrot.slane %v1283_v15, 2  ;;  %vm121_vm6 = vcmask 1046534   ;;  %v1296_v25 = vld [vmem:[#allocation2 + $0x38] sm:$0xff] }
  0x4f   :  { %954 = vmatprep.subr.bf16.mxu0 %v1154_v0  ;;  %v107_v20 = vsel %vm106_vm1, %v105_v13, %v104_v12  ;;  %v120_v23 = vrot.slane %v1285_v16, 1  ;;  %vm123_vm7 = vcmask 1047559   ;;  %vm125_vm8 = vcmask 261120   ;;  %s885_s30 = sshll.u32 %s1159_s3, 4  ;;  %s886_s30 = int_to_ptr.vmem [resolvable:$true] %s885_s30 }
  0x50   :  { %v110_v22 = vsel %vm109_vm2, %v108_v17, %v107_v20  ;;  %v1157_v30 = vmov 1966171168   ;;  %v1307_v34 = vshrl.u32 %v203_v32, 7  ;;  %vm370_vm9 = vcmask 64512   ;;  %s1094_s6 = scalar_lea.vmem %s886_s30, 128  ;;  %p1099_p5 = scmp.lt.s32.totalorder %s886_s30, %s886_s30 }
  0x51   :  { %v113_v24 = vsel %vm112_vm3, %v111_v18, %v110_v22  ;;  %v201_v31 = vunpack.c.l.s4 %v1157_v30  ;;  %p1095_p4 = scmp.ne.s32.totalorder %s886_s30, %s1094_s6  ;;  %p1100_p6 = scmp.lt.s32.totalorder %s1094_s6, %s1094_s6 }
  0x52   :  { %956 = vmatpush3.bf16.msra.mxu0 %v955_v14  ;;  %v116_v26 = vsel %vm115_vm4, %v114_v19, %v113_v24  ;;  %v1311_v40 = vsub.s32 0, %v1307_v34 }
  0x53   :  { %v119_v27 = vsel %vm118_vm5, %v117_v21, %v116_v26  ;;  %v202_v33 = vunpack.c.0.s8 %v201_v31  ;;  %v329_v21 = vand.u32 127, %v203_v32  ;;  %p1101_p7 = por %p1100_p6, %p1099_p5 }
  0x54   :  { %v122_v28 = vsel %vm121_vm6, %v120_v23, %v119_v27 }
  0x55   :  { %v1303_v29 = vsel %vm123_vm7, %v1296_v25, %v122_v28  ;;  %v205_v35 = vsub.s32 %v202_v33, %v1307_v34  ;;  %v1338_v23 = vsub.s32 %v329_v21, %v1307_v34  ;;  %p1102_p8 = pnand %p1101_p7, %p1095_p4 }
  0x56   :  { %927 = vmatmul.mubr.msk.f32.vlgmr.msra.gmra.mrb[0].mxu0 %vm125_vm8, %v1303_v29 }
 0x129   :  { %v194_v36 = vpop.f32.mrb[0].mxu0 }
 0x12a   :  { %v199_v37 = vcombine.high %v194_v36, %v194_v36  ;;  %v206_v38 = vrot.slane %v194_v36, %v205_v35  ;;  %v928_v39 = vpop.f32.mrb[1].mxu0 }
 0x12c   :  { %v213_v41 = vrot.slane %v199_v37, %v205_v35  ;;  %v214_v42 = vcombine.high %v206_v38, %v206_v38  ;;  %v222_v43 = vrot.slane %v206_v38, %v205_v35 }
 0x12e   :  { %v215_v44 = vcombine.high %v213_v41, %v213_v41  ;;  %v229_v45 = vrot.slane %v213_v41, %v205_v35  ;;  %v236_v46 = vrot.slane %v214_v42, %v205_v35  ;;  %v251_v47 = vrot.slane %v222_v43, %v1311_v40 }
 0x12f   :  { %v244_v48 = vcombine.high %v222_v43, %v222_v43 }
 0x130   :  { %v288_v49 = vmul.f32 %v251_v47, %v1271_v7  ;;  %v255_v50 = vrot.slane %v236_v46, %v1311_v40  ;;  %v246_v51 = vcombine.high %v236_v46, %v236_v46  ;;  %v267_v53 = vrot.slane %v229_v45, %v1311_v40 }
 0x131   :  { %v259_v52 = vrot.slane %v244_v48, %v1311_v40  ;;  %v243_v54 = vrot.slane %v215_v44, %v205_v35  ;;  %v245_v58 = vcombine.high %v229_v45, %v229_v45 }
 0x132   :  { %v296_v55 = vsel %vm125_vm8, %v288_v49, 0.0  ;;  %v289_v56 = vmul.f32 %v255_v50, %v1273_v8  ;;  %v263_v57 = vrot.slane %v246_v51, %v1311_v40  ;;  %v292_v3 = vmul.f32 %v267_v53, %v1279_v11 }
 0x133   :  { %297 = vadd.xlane.f32.xlu0 %v296_v55  ;;  %v290_v59 = vmul.f32 %v259_v52, %v1275_v9  ;;  %v271_v62 = vrot.slane %v243_v54, %v1311_v40  ;;  %v247_v63 = vcombine.high %v243_v54, %v243_v54  ;;  %v275_v4 = vrot.slane %v245_v58, %v1311_v40 }
 0x134   :  { %v291_v61 = vmul.f32 %v263_v57, %v1277_v10  ;;  %v299_v2 = vsel %vm125_vm8, %v289_v56, 0.0  ;;  %v308_v13 = vsel %vm125_vm8, %v292_v3, 0.0  ;;  %v1158_v51 = vmov 0  }
 0x135   :  { %v302_v60 = vsel %vm125_vm8, %v290_v59, 0.0  ;;  %v293_v6 = vmul.f32 %v271_v62, %v1283_v15  ;;  %v279_v12 = vrot.slane %v247_v63, %v1311_v40  ;;  %v294_v14 = vmul.f32 %v275_v4, %v1285_v16  ;;  %985 = vset.pattern.permute.xlu0 %v1158_v51  ;;  %984 = vset.pattern.permute.xlu1 %v1158_v51 }
 0x136   :  { %303 = vadd.xlane.f32.xlu1 %v302_v60  ;;  %v305_v5 = vsel %vm125_vm8, %v291_v61, 0.0  ;;  %v381_v52 = vsub.s32 1, %v1307_v34  ;;  %v385_v53 = vsub.s32 2, %v1307_v34  ;;  %v389_v54 = vsub.s32 3, %v1307_v34 }
 0x137   :  { %300 = vadd.xlane.f32.xlu0 %v299_v2  ;;  %v311_v17 = vsel %vm125_vm8, %v293_v6, 0.0  ;;  %v295_v18 = vmul.f32 %v279_v12, %v1296_v25  ;;  %v314_v19 = vsel %vm125_vm8, %v294_v14, 0.0  ;;  %v393_v59 = vsub.s32 4, %v1307_v34 }
 0x138   :  { %v397_v4 = vsub.s32 5, %v1307_v34 }
 0x139   :  { %v317_v20 = vsel %vm125_vm8, %v295_v18, 0.0 }
 0x13a   :  { %306 = vadd.xlane.f32.xlu1 %v305_v5 }
 0x13b   :  { %309 = vadd.xlane.f32.xlu0 %v308_v13  ;;  %v401_v13 = vsub.s32 6, %v1307_v34 }
 0x13e   :  { %312 = vadd.xlane.f32.xlu1 %v311_v17 }
 0x13f   :  { %315 = vadd.xlane.f32.xlu0 %v314_v19  ;;  %v405_v19 = vsub.s32 7, %v1307_v34 }
 0x142   :  { %318 = vadd.xlane.f32.xlu1 %v317_v20 }
 0x1c0   :  { %v298_v22 = vpop.xlane.xlu0 %297 }
 0x1c1   :  { %v333_v27 = vrot.slane %v298_v22, %v1338_v23 }
 0x1c3   :  { %v304_v24 = vpop.xlane.xlu1 %303 }
 0x1c4   :  { %v301_v26 = vpop.xlane.xlu0 %300  ;;  %v341_v30 = vrot.slane %v304_v24, %v1338_v23 }
 0x1c5   :  { %v337_v28 = vrot.slane %v301_v26, %v1338_v23 }
 0x1c7   :  { %v362_v31 = vsel %vm106_vm1, %v337_v28, %v333_v27  ;;  %v307_v33 = vpop.xlane.xlu1 %306 }
 0x1c8   :  { %v363_v35 = vsel %vm109_vm2, %v341_v30, %v362_v31  ;;  %v345_v36 = vrot.slane %v307_v33, %v1338_v23  ;;  %v310_v32 = vpop.xlane.xlu0 %309 }
 0x1c9   :  { %v349_v37 = vrot.slane %v310_v32, %v1338_v23 }
 0x1ca   :  { %v364_v38 = vsel %vm112_vm3, %v345_v36, %v363_v35 }
 0x1cb   :  { %v365_v39 = vsel %vm115_vm4, %v349_v37, %v364_v38  ;;  %v313_v41 = vpop.xlane.xlu1 %312 }
 0x1cc   :  { %v353_v42 = vrot.slane %v313_v41, %v1338_v23  ;;  %v316_v43 = vpop.xlane.xlu0 %315 }
 0x1cd   :  { %v357_v44 = vrot.slane %v316_v43, %v1338_v23 }
 0x1ce   :  { %v366_v45 = vsel %vm118_vm5, %v353_v42, %v365_v39 }
 0x1cf   :  { %v319_v46 = vpop.xlane.xlu1 %318  ;;  %v367_v47 = vsel %vm121_vm6, %v357_v44, %v366_v45 }
 0x1d0   :  { %v361_v48 = vrot.slane %v319_v46, %v1338_v23 }
 0x1d2   :  { %v368_v49 = vsel %vm123_vm7, %v361_v48, %v367_v47 }
 0x1d3   :  { %v371_v50 = vsel %vm370_vm9, %v368_v49, -inf }
 0x1d4   :  { %372 = vmax.xlane.f32.xlu0 %v371_v50 }
 0x261   :  { %v373_v55 = vpop.xlane.xlu0 %372 }
 0x262   :  { %v378_v56 = vrot.slane %v373_v55, %v1311_v40  ;;  %v382_v57 = vrot.slane %v373_v55, %v381_v52  ;;  %v386_v58 = vrot.slane %v373_v55, %v385_v53  ;;  %v390_v60 = vrot.slane %v373_v55, %v389_v54 }
 0x263   :  { %v394_v5 = vrot.slane %v373_v55, %v393_v59  ;;  %v398_v14 = vrot.slane %v373_v55, %v397_v4  ;;  %v402_v20 = vrot.slane %v373_v55, %v401_v13  ;;  %v406_v27 = vrot.slane %v373_v55, %v405_v19 }
 0x264   :  { %v415_v61 = vsub.f32 %v298_v22, %v378_v56  ;;  %v416_v62 = vsub.f32 %v301_v26, %v382_v57  ;;  %v417_v63 = vsub.f32 %v304_v24, %v386_v58  ;;  %v418_v6 = vsub.f32 %v307_v33, %v390_v60 }
 0x265   :  { %v419_v17 = vsub.f32 %v310_v32, %v394_v5  ;;  %v420_v21 = vsub.f32 %v313_v41, %v398_v14  ;;  %v421_v28 = vsub.f32 %v316_v43, %v402_v20  ;;  %v422_v33 = vsub.f32 %v319_v46, %v406_v27 }
 0x266   :  { %v423_v2 = vmul.f32 1.442695, %v415_v61  ;;  %v425_v3 = vmul.f32 1.442695, %v416_v62  ;;  %v427_v12 = vmul.f32 1.442695, %v417_v63 }
 0x267   :  { %v429_v18 = vmul.f32 1.442695, %v418_v6  ;;  %v431_v22 = vmul.f32 1.442695, %v419_v17  ;;  %v433_v30 = vmul.f32 1.442695, %v420_v21 }
 0x268   :  { %986 = vpow2.f32 %v423_v2  ;;  %v435_v35 = vmul.f32 1.442695, %v421_v28  ;;  %v437_v32 = vmul.f32 1.442695, %v422_v33 }
 0x269   :  { %988 = vpow2.f32 %v425_v3 }
 0x26a   :  { %990 = vpow2.f32 %v427_v12 }
 0x26b   :  { %992 = vpow2.f32 %v429_v18 }
 0x26c   :  { %994 = vpow2.f32 %v431_v22 }
 0x26d   :  { %996 = vpow2.f32 %v433_v30 }
 0x26e   :  { %998 = vpow2.f32 %v435_v35 }
 0x26f   :  { %1000 = vpow2.f32 %v437_v32 }
 0x272   :  { %v987_v24 = vpop.eup %986 }
 0x273   :  { %v989_v26 = vpop.eup %988  ;;  %448 = vperm.xlu1 %984, %v987_v24  }
 0x274   :  { %451 = vperm.xlu0 %985, %v989_v26   ;;  %v991_v31 = vpop.eup %990 }
 0x275   :  { %v993_v36 = vpop.eup %992 }
 0x276   :  { %v995_v37 = vpop.eup %994 }
 0x277   :  { %454 = vperm.xlu1 %984, %v991_v31   ;;  %v997_v38 = vpop.eup %996 }
 0x278   :  { %v999_v39 = vpop.eup %998 }
 0x279   :  { %v1001_v41 = vpop.eup %1000 }
 0x27b   :  { %457 = vperm.xlu1 %984, %v993_v36  }
 0x27f   :  { %460 = vperm.xlu1 %984, %v995_v37  }
 0x283   :  { %463 = vperm.xlu1 %984, %v997_v38  }
 0x287   :  { %466 = vperm.xlu1 %984, %v999_v39  }
 0x28b   :  { %469 = vperm.xlu1 %984, %v1001_v41  }
 0x2f2   :  { %v449_v42 = vpop.permute.xlu1 %448 }
 0x2f3   :  { %v452_v46 = vpop.permute.xlu0 %451  ;;  %v474_v49 = vrot.slane %v449_v42, %v1338_v23 }
 0x2f4   :  { %v478_v48 = vrot.slane %v452_v46, %v1338_v23 }
 0x2f6   :  { %v455_v43 = vpop.permute.xlu1 %454  ;;  %v503_v57 = vsel %vm106_vm1, %v478_v48, %v474_v49 }
 0x2f7   :  { %v482_v50 = vrot.slane %v455_v43, %v1338_v23  ;;  %v90_v43 = vld [vmem:[#allocation7 + $0x10] sm:$0xff] }
 0x2f9   :  { %v504_v60 = vsel %vm109_vm2, %v482_v50, %v503_v57 }
 0x2fa   :  { %v458_v44 = vpop.permute.xlu1 %457 }
 0x2fb   :  { %v486_v51 = vrot.slane %v458_v44, %v1338_v23 }
 0x2fd   :  { %v505_v62 = vsel %vm112_vm3, %v486_v51, %v504_v60 }
 0x2fe   :  { %v461_v45 = vpop.permute.xlu1 %460 }
 0x2ff   :  { %v490_v55 = vrot.slane %v461_v45, %v1338_v23 }
 0x301   :  { %v506_v63 = vsel %vm115_vm4, %v490_v55, %v505_v62 }
 0x302   :  { %v464_v47 = vpop.permute.xlu1 %463 }
 0x303   :  { %v494_v58 = vrot.slane %v464_v47, %v1338_v23 }
 0x305   :  { %v507_v3 = vsel %vm118_vm5, %v494_v58, %v506_v63 }
 0x306   :  { %v467_v56 = vpop.permute.xlu1 %466 }
 0x307   :  { %v498_v61 = vrot.slane %v467_v56, %v1338_v23 }
 0x309   :  { %v508_v6 = vsel %vm121_vm6, %v498_v61, %v507_v3 }
 0x30a   :  { %v470_v2 = vpop.permute.xlu1 %469 }
 0x30b   :  { %v502_v5 = vrot.slane %v470_v2, %v1338_v23 }
 0x30d   :  { %v509_v12 = vsel %vm123_vm7, %v502_v5, %v508_v6 }
 0x30e   :  { %v511_v14 = vsel %vm370_vm9, %v509_v12, 0.0 }
 0x30f   :  { %512 = vadd.xlane.f32.xlu1 %v511_v14 }
 0x39c   :  { %v513_v17 = vpop.xlane.xlu1 %512 }
 0x39d   :  { %1002 = vrcp.f32 %v513_v17 }
 0x3a7   :  { %v1003_v18 = vpop.eup %1002 }
 0x3a8   :  { %v519_v20 = vrot.slane %v1003_v18, %v1311_v40  ;;  %v523_v22 = vrot.slane %v1003_v18, %v381_v52  ;;  %v527_v28 = vrot.slane %v1003_v18, %v385_v53  ;;  %v531_v33 = vrot.slane %v1003_v18, %v389_v54 }
 0x3a9   :  { %v535_v32 = vrot.slane %v1003_v18, %v393_v59  ;;  %v539_v52 = vrot.slane %v1003_v18, %v397_v4  ;;  %v543_v53 = vrot.slane %v1003_v18, %v401_v13  ;;  %v547_v54 = vrot.slane %v1003_v18, %v405_v19  ;;  %v93_v59 = vld [vmem:[#allocation8 + $0x8] sm:$0xff]  ;;  %v94_v4 = vld [vmem:[#allocation8 + $0x10] sm:$0xff]  ;;  %v88_v13 = vld [vmem:[#allocation7] sm:$0xff] }
 0x3aa   :  { %v556_v21 = vmul.f32 %v987_v24, %v519_v20  ;;  %v557_v27 = vmul.f32 %v989_v26, %v523_v22  ;;  %v558_v30 = vmul.f32 %v991_v31, %v527_v28  ;;  %v559_v35 = vmul.f32 %v993_v36, %v531_v33  ;;  %v92_v36 = vld [vmem:[#allocation8] sm:$0xff]  ;;  %v91_v19 = vld [vmem:[#allocation7 + $0x18] sm:$0xff] }
 0x3ab   :  { %v560_v40 = vmul.f32 %v995_v37, %v535_v32  ;;  %v561_v24 = vmul.f32 %v997_v38, %v539_v52  ;;  %v562_v26 = vmul.f32 %v999_v39, %v543_v53  ;;  %v563_v31 = vmul.f32 %v1001_v41, %v547_v54  ;;  %v95_v37 = vld [vmem:[#allocation8 + $0x18] sm:$0xff]  ;;  %v89_v39 = vld [vmem:[#allocation7 + $0x8] sm:$0xff] }
 0x3ac   :  { %566 = vperm.xlu0 %985, %v556_v21   ;;  %v958_v42 = vpack.c.bf16 %v93_v59, %v92_v36  ;;  %v961_v38 = vpack.c.bf16 %v95_v37, %v94_v4  ;;  %v964_v34 = vpack.c.bf16 %v89_v39, %v88_v13  ;;  %v967_v41 = vpack.c.bf16 %v91_v19, %v90_v43 }
 0x3ae   :  { %959 = vmatpush3.bf16.msra.mxu1 %v958_v42 }
 0x3af   :  { %960 = vmatprep.subr.bf16.mxu1 %v1154_v0 }
 0x3b0   :  { %571 = vperm.xlu0 %985, %v557_v27  }
 0x3b2   :  { %962 = vmatpush3.bf16.msra.mxu1 %v961_v38 }
 0x3b3   :  { %963 = vmatprep.subr.bf16.mxu1 %v1154_v0 }
 0x3b4   :  { %576 = vperm.xlu0 %985, %v558_v30  }
 0x3b5   :  { %938 = vmatmul.mubr.msk.f32.vlgmr.msra.gmra.mrb[0].mxu1 %vm125_vm8, %v1303_v29 }
 0x3b6   :  { %965 = vmatpush3.bf16.msra.mxu1 %v964_v34  ;;  %948 = vmatprep.mubr.msk.f32.mxu1 %vm1155_vm0, %v1156_v1 }
 0x3b7   :  { %966 = vmatprep.subr.bf16.mxu1 %v1154_v0 }
 0x3b8   :  { %581 = vperm.xlu0 %985, %v559_v35  }
 0x3ba   :  { %968 = vmatpush3.bf16.msra.mxu1 %v967_v41 }
 0x3bc   :  { %586 = vperm.xlu0 %985, %v560_v40  }
 0x3c0   :  { %591 = vperm.xlu0 %985, %v561_v24  }
 0x3c4   :  { %596 = vperm.xlu0 %985, %v562_v26  }
 0x3c8   :  { %601 = vperm.xlu0 %985, %v563_v31  }
 0x42b   :  { %v567_v44 = vpop.permute.xlu0 %566 }
 0x42c   :  { %v604_v47 = vmul.f32 %v567_v44, %v1271_v7  ;;  %v830_v12 = vrot.slane %v567_v44, %v1338_v23 }
 0x42e   :  { %v612_v29 = vsel %vm125_vm8, %v604_v47, 0.0 }
 0x42f   :  { %v572_v45 = vpop.permute.xlu0 %571  ;;  %v613_v56 = vrot.slane %v612_v29, 4 }
 0x430   :  { %v605_v46 = vmul.f32 %v572_v45, %v1273_v8  ;;  %v834_v6 = vrot.slane %v572_v45, %v1338_v23 }
 0x432   :  { %v619_v50 = vsel %vm125_vm8, %v605_v46, 0.0  ;;  %v859_v35 = vsel %vm106_vm1, %v834_v6, %v830_v12 }
 0x433   :  { %v577_v48 = vpop.permute.xlu0 %576  ;;  %v620_v0 = vrot.slane %v619_v50, 4 }
 0x434   :  { %v606_v49 = vmul.f32 %v577_v48, %v1275_v9  ;;  %v614_v9 = vadd.f32 %v613_v56, %v612_v29  ;;  %v838_v17 = vrot.slane %v577_v48, %v1338_v23 }
 0x435   :  { %v621_v61 = vadd.f32 %v620_v0, %v619_v50 }
 0x436   :  { %v626_v51 = vsel %vm125_vm8, %v606_v49, 0.0  ;;  %v615_v20 = vrot.slane %v614_v9, 2  ;;  %v860_v24 = vsel %vm109_vm2, %v838_v17, %v859_v35 }
 0x437   :  { %v582_v55 = vpop.permute.xlu0 %581  ;;  %v627_v57 = vrot.slane %v626_v51, 4  ;;  %v622_v14 = vrot.slane %v621_v61, 2 }
 0x438   :  { %v607_v1 = vmul.f32 %v582_v55, %v1277_v10  ;;  %v842_v21 = vrot.slane %v582_v55, %v1338_v23  ;;  %v616_v54 = vadd.f32 %v615_v20, %v614_v9 }
 0x439   :  { %v628_v62 = vadd.f32 %v627_v57, %v626_v51  ;;  %v623_v52 = vadd.f32 %v622_v14, %v621_v61 }
 0x43a   :  { %v633_v58 = vsel %vm125_vm8, %v607_v1, 0.0  ;;  %v861_v36 = vsel %vm112_vm3, %v842_v21, %v860_v24  ;;  %v617_v49 = vrot.slane %v616_v54, 1 }
 0x43b   :  { %v634_v8 = vrot.slane %v633_v58, 4  ;;  %v587_v60 = vpop.permute.xlu0 %586  ;;  %v624_v19 = vrot.slane %v623_v52, 1 }
 0x43c   :  { %v608_v7 = vmul.f32 %v587_v60, %v1279_v11  ;;  %v629_v11 = vrot.slane %v628_v62, 2  ;;  %v846_v28 = vrot.slane %v587_v60, %v1338_v23 }
 0x43d   :  { %v635_v2 = vadd.f32 %v634_v8, %v633_v58  ;;  %v618_v58 = vadd.f32 %v617_v49, %v616_v54 }
 0x43e   :  { %v640_v63 = vsel %vm125_vm8, %v608_v7, 0.0  ;;  %v630_v31 = vadd.f32 %v629_v11, %v628_v62  ;;  %v862_v4 = vsel %vm115_vm4, %v846_v28, %v861_v36 }
 0x43f   :  { %v641_v3 = vrot.slane %v640_v63, 4  ;;  %v592_v5 = vpop.permute.xlu0 %591  ;;  %v636_v27 = vrot.slane %v635_v2, 2 }
 0x440   :  { %v609_v10 = vmul.f32 %v592_v5, %v1283_v15  ;;  %v850_v32 = vrot.slane %v592_v5, %v1338_v23  ;;  %v631_v46 = vrot.slane %v630_v31, 1 }
 0x441   :  { %v642_v18 = vadd.f32 %v641_v3, %v640_v63  ;;  %v637_v42 = vadd.f32 %v636_v27, %v635_v2 }
 0x442   :  { %v647_v22 = vsel %vm125_vm8, %v609_v10, 0.0  ;;  %v632_v57 = vadd.f32 %v631_v46, %v630_v31 }
 0x443   :  { %v648_v30 = vrot.slane %v647_v22, 4  ;;  %v597_v33 = vpop.permute.xlu0 %596  ;;  %v643_v15 = vrot.slane %v642_v18, 2  ;;  %v638_v50 = vrot.slane %v637_v42, 1 }
 0x444   :  { %v610_v40 = vmul.f32 %v597_v33, %v1285_v16  ;;  %v854_v26 = vrot.slane %v597_v33, %v1338_v23  ;;  %v863_v16 = vsel %vm118_vm5, %v850_v32, %v862_v4 }
 0x445   :  { %v649_v53 = vadd.f32 %v648_v30, %v647_v22  ;;  %v644_v39 = vadd.f32 %v643_v15, %v642_v18  ;;  %v639_v8 = vadd.f32 %v638_v50, %v637_v42 }
 0x446   :  { %v654_v59 = vsel %vm125_vm8, %v610_v40, 0.0  ;;  %v864_v45 = vsel %vm121_vm6, %v854_v26, %v863_v16 }
 0x447   :  { %v650_v37 = vrot.slane %v649_v53, 2  ;;  %v655_v38 = vrot.slane %v654_v59, 4  ;;  %v602_v13 = vpop.permute.xlu0 %601  ;;  %v645_v55 = vrot.slane %v644_v39, 1 }
 0x448   :  { %v611_v43 = vmul.f32 %v602_v13, %v1296_v25  ;;  %v858_v34 = vrot.slane %v602_v13, %v1338_v23  ;;  %v625_v25 = vadd.f32 %v624_v19, %v623_v52 }
 0x449   :  { %v651_v41 = vadd.f32 %v650_v37, %v649_v53  ;;  %v656_v44 = vadd.f32 %v655_v38, %v654_v59  ;;  %v646_v61 = vadd.f32 %v645_v55, %v644_v39 }
 0x44a   :  { %v661_v47 = vsel %vm125_vm8, %v611_v43, 0.0  ;;  %v865_v48 = vsel %vm123_vm7, %v858_v34, %v864_v45  ;;  %v746_v9 = vsel %vm106_vm1, %v625_v25, %v618_v58 }
 0x44b   :  { %v657_v29 = vrot.slane %v656_v44, 2  ;;  %v662_v51 = vrot.slane %v661_v47, 4  ;;  %v867_v1 = vsel %vm370_vm9, %v865_v48, 0.0  ;;  %v652_v0 = vrot.slane %v651_v41, 1 }
 0x44c   :  { %868 = vst [vmem:[#allocation11] sm:$0xff] %v867_v1  ;;  %v747_v2 = vsel %vm109_vm2, %v632_v57, %v746_v9 }
 0x44d   :  { %v658_v23 = vadd.f32 %v657_v29, %v656_v44  ;;  %v663_v56 = vadd.f32 %v662_v51, %v661_v47  ;;  %v653_v62 = vadd.f32 %v652_v0, %v651_v41  ;;  %v748_v5 = vsel %vm112_vm3, %v639_v8, %v747_v2 }
 0x44e   :  { %v749_v10 = vsel %vm115_vm4, %v646_v61, %v748_v5 }
 0x44f   :  { %v659_v60 = vrot.slane %v658_v23, 1  ;;  %v664_v7 = vrot.slane %v663_v56, 2  ;;  %v750_v14 = vsel %vm118_vm5, %v653_v62, %v749_v10 }
 0x451   :  { %v665_v63 = vadd.f32 %v664_v7, %v663_v56  ;;  %v660_v3 = vadd.f32 %v659_v60, %v658_v23 }
 0x453   :  { %v666_v6 = vrot.slane %v665_v63, 1  ;;  %v751_v17 = vsel %vm121_vm6, %v660_v3, %v750_v14 }
 0x455   :  { %v667_v12 = vadd.f32 %v666_v6, %v665_v63 }
 0x457   :  { %v752_v18 = vsel %vm123_vm7, %v667_v12, %v751_v17 }
 0x458   :  { %949 = vmatmul.mubr.msk.f32.vlgmr.msra.gmra.mrb[0].mxu1 %vm125_vm8, %v752_v18 }
 0x459   :  { %1105 = shalt.err (!%p1102_p8)
}
 0x45a   :  { %s1106_s18 = scalar_lea.hbm %s1486_s5, 128 }
 0x45b   :  { %p1107_p9 = scmp.ne.s32.totalorder %s1486_s5, %s1106_s18  ;;  %p1110_p10 = scmp.lt.u32.totalorder %s1106_s18, %s1486_s5 }
 0x45d   :  { %p1112_p11 = pnand %p1110_p10, %p1107_p9 }
 0x45f   :  { %1115 = shalt.err (!%p1112_p11)
}
 0x460   :  { %888 = dma.vmem_to_hbm [thread:$0]  %s886_s30, 128, %s1486_s5, [#allocation12]  }
 0x461   :  { %s1160_s26 = smov [#allocation10]  }
 0x462   :  { %s875_s27 = sshll.u32 %s1160_s26, 4  ;;  %s876_s27 = int_to_ptr.vmem [resolvable:$true] %s875_s27 }
 0x463   :  { %s1116_s28 = scalar_lea.vmem %s876_s27, 128  ;;  %p1121_p13 = scmp.lt.s32.totalorder %s876_s27, %s876_s27 }
 0x464   :  { %p1117_p12 = scmp.ne.s32.totalorder %s876_s27, %s1116_s28  ;;  %p1122_p0 = scmp.lt.s32.totalorder %s1116_s28, %s1116_s28 }
 0x466   :  { %p1123_p1 = por %p1122_p0, %p1121_p13 }
 0x468   :  { %p1124_p2 = pnand %p1123_p1, %p1117_p12 }
 0x52b   :  { %v821_v20 = vpop.f32.mrb[0].mxu1 }
 0x52c   :  { %1004 = vtanh.f32 %v821_v20  ;;  %v950_v11 = vpop.f32.mrb[1].mxu1 }
 0x536   :  { %v1005_v21 = vpop.eup %1004 }
 0x537   :  { %826 = vst.msk [vmem:[#allocation10] sm:$0xff] %vm125_vm8, %v1005_v21 }
 0x538   :  { %1127 = shalt.err (!%p1124_p2)
}
 0x539   :  { %s1128_s5 = scalar_lea.hbm %s1485_s4, 128 }
 0x53a   :  { %p1129_p3 = scmp.ne.s32.totalorder %s1485_s4, %s1128_s5  ;;  %p1132_p4 = scmp.lt.u32.totalorder %s1128_s5, %s1485_s4 }
 0x53c   :  { %p1134_p5 = pnand %p1132_p4, %p1129_p3 }
 0x53e   :  { %1137 = shalt.err (!%p1134_p5)
}
 0x53f   :  { %878 = dma.vmem_to_hbm [thread:$0]  %s876_s27, 128, %s1485_s4, [#allocation4]  }
 0x540   :  { %1144 = dma.done.wait [#allocation4], 128  }
 0x541   :  { %1145 = vsyncadd [#allocation4], 4294967168 }
 0x542   :  { %1146 = dma.done.wait [#allocation12], 128  }
 0x543   :  { %1147 = vsyncadd [#allocation12], 4294967168 }
 0x544   :  { %895 = vsyncpa [#allocation3], 1 }
 0x545   :  { %896 = vsyncpa [#allocation6], 1 }
 0x546   :  { %897 = vsyncpa [#allocation9], 1 }
 0x547   :  { %898 = vsyncpa [#allocation4], 1 }
 0x548   :  { %899 = vsyncpa [#allocation12], 1 }

</bundles_post_ra>
